<compile_context>
chip_gen: v5e
topology: v5e:2x2
jax: 0.10.0
libtpu: 0.0.40
codegen_flags: <defaults>
</compile_context>

<pallas_src>
import functools

import jax
import jax.numpy as jnp
from jax.experimental import pallas as pl
from jax.experimental.pallas import tpu as pltpu


def _round_up(x, m):
    return (x + m - 1) // m * m


def _angle_head_kernel(
    x_ref,                   # (tile, d_s)      input dtype (cast to bf16 in-kernel)
    xi_ref,                  # (tile, d_s)      input dtype
    ws_ref, wi_ref,          # (d_s, d_h_pad)   bf16
    w11_ref, w12_ref,        # (d_h_pad, d_h_pad) bf16
    w21_ref, w22_ref,        # (d_h_pad, d_h_pad) bf16
    w3_ref,                  # (d_h_pad, d_o_pad) bf16
    bias_ref,                # (8, d_h_pad) f32: rows 0..5 = (bs+bi), b11, b12, b21, b22, b3
    out_ref,                 # (tile, d_o_pad)  bf16, lane-dense
):
    """Fused forward for one row tile: 7 MXU matmuls + ReLUs + residual adds."""
    d_o_pad = out_ref.shape[-1]

    biases = bias_ref[...]                 # f32, loaded once
    b_si = biases[0:1, :]
    b11 = biases[1:2, :]
    b12 = biases[2:3, :]
    b21 = biases[3:4, :]
    b22 = biases[4:5, :]
    b3 = biases[5:6, :d_o_pad]

    # Input projection: cast activations to bf16 in-kernel (no wrapper-side
    # HBM repack), two MXU dots with f32 accumulation, fold both biases.
    x = x_ref[...].astype(jnp.bfloat16)
    xi = xi_ref[...].astype(jnp.bfloat16)
    h = (jnp.dot(x, ws_ref[...], preferred_element_type=jnp.float32)
         + jnp.dot(xi, wi_ref[...], preferred_element_type=jnp.float32)
         + b_si)

    def _mlp(h_f32, wa_ref, ba, wb_ref, bb):
        # ReLU -> Linear -> ReLU -> Linear (f32 elementwise, bf16 matmul operands).
        t = jnp.maximum(h_f32, 0.0).astype(jnp.bfloat16)
        t = jnp.dot(t, wa_ref[...], preferred_element_type=jnp.float32) + ba
        t = jnp.maximum(t, 0.0).astype(jnp.bfloat16)
        return jnp.dot(t, wb_ref[...], preferred_element_type=jnp.float32) + bb

    h = h + _mlp(h, w11_ref, b11, w12_ref, b12)   # h + mlp-1(h)
    h = h + _mlp(h, w21_ref, b21, w22_ref, b22)   # h + mlp-2(h)

    # mlp-3 = ReLU -> Linear(hidden -> num_angles*2), lane-dense (padded) output.
    t = jnp.maximum(h, 0.0).astype(jnp.bfloat16)
    out = jnp.dot(t, w3_ref[...], preferred_element_type=jnp.float32) + b3
    out_ref[...] = out.astype(out_ref.dtype)


def pack_angle_head_params(params, num_angles=7):
    """One-time parameter repack (call ONCE, outside the jitted forward).

    Pads only the lane (output) dims of the weights to 128, keeps the first
    matmul's K dim at D_s (no padded-zero K work), casts weights to bf16, and
    packs all biases (bs+bi folded) into one (8, d_h_pad) f32 slab.
    """
    d_s, d_h = params["ws"].shape
    d_o = num_angles * 2
    d_h_pad = _round_up(d_h, 128)
    d_o_pad = _round_up(d_o, 128)
    assert d_h_pad >= d_o_pad, "bias packing assumes d_h_pad >= padded output width"

    def _padw(w, rows, cols):
        r, c = w.shape
        return jnp.pad(w.astype(jnp.float32),
                       ((0, rows - r), (0, cols - c))).astype(jnp.bfloat16)

    packed = {
        "ws": _padw(params["ws"], d_s, d_h_pad),        # (d_s, d_h_pad)
        "wi": _padw(params["wi"], d_s, d_h_pad),        # (d_s, d_h_pad)
        "w11": _padw(params["w11"], d_h_pad, d_h_pad),
        "w12": _padw(params["w12"], d_h_pad, d_h_pad),
        "w21": _padw(params["w21"], d_h_pad, d_h_pad),
        "w22": _padw(params["w22"], d_h_pad, d_h_pad),
        "w3": _padw(params["w3"], d_h_pad, d_o_pad),
    }

    bias_pack = jnp.zeros((8, d_h_pad), jnp.float32)
    bias_pack = bias_pack.at[0, :d_h].set(
        (params["bs"] + params["bi"]).reshape(-1).astype(jnp.float32))
    bias_pack = bias_pack.at[1, :d_h].set(params["b11"].reshape(-1).astype(jnp.float32))
    bias_pack = bias_pack.at[2, :d_h].set(params["b12"].reshape(-1).astype(jnp.float32))
    bias_pack = bias_pack.at[3, :d_h].set(params["b21"].reshape(-1).astype(jnp.float32))
    bias_pack = bias_pack.at[4, :d_h].set(params["b22"].reshape(-1).astype(jnp.float32))
    bias_pack = bias_pack.at[5, :d_o].set(params["b3"].reshape(-1).astype(jnp.float32))
    packed["bias"] = bias_pack
    return packed


def angle_head_forward(sfcd, sfcd_init, packed, *, num_angles=7, tile_rows=1024):
    """Pallas AngleHead forward.

    Args:
      sfcd:      [N, L, D_s] single features.
      sfcd_init: [N, L, D_s] initial single features.
      packed:    output of pack_angle_head_params(params).
      num_angles: K.
      tile_rows:  requested row tile (rounded to a multiple of 256, clamped to
                  the problem size; v5e/v6e can use 2048).

    Returns:
      angl_tns: [N, L, num_angles, 2] in sfcd.dtype.
    """
    n, l, d_s = sfcd.shape
    d_o = num_angles * 2
    d_h_pad = packed["w11"].shape[0]
    d_o_pad = packed["w3"].shape[1]
    assert packed["ws"].shape[0] == d_s

    # --- Row tiling: large MXU-friendly tiles, ragged last block, no padding.
    m = n * l
    tile = max(256, _round_up(min(tile_rows, m), 256))
    grid = (pl.cdiv(m, tile),)

    in_dtype = sfcd.dtype
    in_bytes = jnp.dtype(in_dtype).itemsize

    # Activations: plain (M, D_s) views — no concat/pad/cast HBM passes.
    x = sfcd.reshape(m, d_s)
    xi = sfcd_init.reshape(m, d_s)

    # --- BlockSpecs -----------------------------------------------------------
    # Block last dim == full array dim (d_s), so no lane pad needed in HBM.
    x_spec = pl.BlockSpec((tile, d_s), lambda i: (i, 0))
    out_spec = pl.BlockSpec((tile, d_o_pad), lambda i: (i, 0))

    def _full_spec(shape):
        # Whole (small) parameter, resident for every grid step (constant block
        # index => Pallas does not re-DMA it).  Weights total <1 MiB, so the
        # extra pipeline buffer is immaterial even under v7x's 64 MiB VMEM.
        return pl.BlockSpec(shape, lambda i: (0,) * len(shape))

    weight_args = (packed["ws"], packed["wi"], packed["w11"], packed["w12"],
                   packed["w21"], packed["w22"], packed["w3"], packed["bias"])
    weight_specs = [_full_spec(a.shape) for a in weight_args]

    # --- Cost estimate + VMEM budget hint ------------------------------------
    flops = 2 * m * (2 * d_s * d_h_pad + 4 * d_h_pad * d_h_pad + d_h_pad * d_o_pad)
    weight_bytes = sum(int(a.size) * jnp.dtype(a.dtype).itemsize for a in weight_args)
    bytes_accessed = 2 * m * d_s * in_bytes + weight_bytes + m * d_o_pad * 2
    cost = pl.CostEstimate(flops=flops, transcendentals=0,
                           bytes_accessed=bytes_accessed)

    # Per-step VMEM: double-buffered input + bf16 output tiles, resident
    # weights (2 bufs), f32 intermediate headroom.  Only raise the scoped
    # limit if we exceed the 32 MiB default; cap below v7x's 64 MiB physical.
    per_step_bytes = (2 * tile * d_s * in_bytes * 2     # x, xi tiles, 2 bufs each
                      + tile * d_o_pad * 2 * 2          # bf16 output tile, 2 bufs
                      + weight_bytes * 2                # resident weights
                      + 4 * tile * d_h_pad * 4)         # f32 h/t headroom
    vmem_limit = None
    if per_step_bytes > (32 << 20):
        vmem_limit = min(per_step_bytes * 2, 56 << 20)

    out = pl.pallas_call(
        _angle_head_kernel,
        out_shape=jax.ShapeDtypeStruct((m, d_o_pad), jnp.bfloat16),
        grid_spec=pltpu.PrefetchScalarGridSpec(
            num_scalar_prefetch=0,
            grid=grid,
            in_specs=[x_spec, x_spec] + weight_specs,
            out_specs=out_spec,
        ),
        compiler_params=pltpu.CompilerParams(
            dimension_semantics=("parallel",),
            vmem_limit_bytes=vmem_limit,
        ),
        cost_estimate=cost,
    )(x, xi, *weight_args)

    # Strip lane padding on the small output, cast back, reshape to N x L x K x 2.
    return out[:, :d_o].astype(in_dtype).reshape(n, l, num_angles, 2)


def init_angle_head_params(key, n_dims_sfcd, n_dims_hidd, num_angles=7):
    """Deterministic synthetic parameters. Weights are (in, out); biases are (1, out)."""
    d_o = num_angles * 2
    shapes = {
        "ws": (n_dims_sfcd, n_dims_hidd), "bs": (1, n_dims_hidd),
        "wi": (n_dims_sfcd, n_dims_hidd), "bi": (1, n_dims_hidd),
        "w11": (n_dims_hidd, n_dims_hidd), "b11": (1, n_dims_hidd),
        "w12": (n_dims_hidd, n_dims_hidd), "b12": (1, n_dims_hidd),
        "w21": (n_dims_hidd, n_dims_hidd), "b21": (1, n_dims_hidd),
        "w22": (n_dims_hidd, n_dims_hidd), "b22": (1, n_dims_hidd),
        "w3": (n_dims_hidd, d_o), "b3": (1, d_o),
    }
    params = {}
    keys = jax.random.split(key, len(shapes))
    for k_rng, (name, shape) in zip(keys, sorted(shapes.items())):
        params[name] = (0.05 * jax.random.normal(k_rng, shape)).astype(jnp.float32)
    return params


def angle_head_reference(sfcd, sfcd_init, params, num_angles=7):
    """Plain-JAX f32 reference matching the PyTorch forward."""
    def lin(x, w, b):
        return x @ w + b
    h = lin(sfcd, params["ws"], params["bs"]) + lin(sfcd_init, params["wi"], params["bi"])
    t = jax.nn.relu(h)
    t = lin(t, params["w11"], params["b11"])
    t = jax.nn.relu(t)
    t = lin(t, params["w12"], params["b12"])
    h = h + t
    t = jax.nn.relu(h)
    t = lin(t, params["w21"], params["b21"])
    t = jax.nn.relu(t)
    t = lin(t, params["w22"], params["b22"])
    h = h + t
    out = lin(jax.nn.relu(h), params["w3"], params["b3"])
    n, l, _ = sfcd.shape
    return out.reshape(n, l, num_angles, 2)


if __name__ == "__main__":
    N, L, D_S, D_H, K = 2, 8, 32, 32, 7

    key = jax.random.PRNGKey(0)
    k_x, k_xi, k_p = jax.random.split(key, 3)

    sfcd = jax.random.normal(k_x, (N, L, D_S), dtype=jnp.float32)
    sfcd_init = jax.random.normal(k_xi, (N, L, D_S), dtype=jnp.float32)
    params = init_angle_head_params(k_p, D_S, D_H, num_angles=K)

    # One-time weight repack, hoisted out of the per-call (jitted) forward.
    packed = pack_angle_head_params(params, num_angles=K)

    fwd = jax.jit(functools.partial(angle_head_forward, num_angles=K, tile_rows=1024))
    angl = fwd(sfcd, sfcd_init, packed)
    angl = jax.block_until_ready(angl)

    assert angl.shape == (N, L, K, 2), angl.shape

    ref = angle_head_reference(sfcd, sfcd_init, params, num_angles=K)
    # bf16 matmul operands / bf16 output store with f32 accumulation -> loosen
    # tolerance vs the f32 reference.
    max_err = float(jnp.max(jnp.abs(angl - ref)))
    assert jnp.allclose(angl, ref, atol=3e-2, rtol=3e-2), \
        f"mismatch vs reference (max abs err {max_err})"

    print("KERNEL_OK")
</pallas_src>

<mosaic_0001>
module attributes {stable_mosaic.version = 11 : i64} {
  func.func @_angle_head_kernel(%arg0: i32, %arg1: memref<256x32xf32, #tpu.memory_space<vmem>>, %arg2: memref<256x32xf32, #tpu.memory_space<vmem>>, %arg3: memref<32x128xbf16, #tpu.memory_space<vmem>>, %arg4: memref<32x128xbf16, #tpu.memory_space<vmem>>, %arg5: memref<128x128xbf16, #tpu.memory_space<vmem>>, %arg6: memref<128x128xbf16, #tpu.memory_space<vmem>>, %arg7: memref<128x128xbf16, #tpu.memory_space<vmem>>, %arg8: memref<128x128xbf16, #tpu.memory_space<vmem>>, %arg9: memref<128x128xbf16, #tpu.memory_space<vmem>>, %arg10: memref<8x128xf32, #tpu.memory_space<vmem>>, %arg11: memref<256x128xbf16, #tpu.memory_space<vmem>>) attributes {dimension_semantics = [#tpu.dimension_semantics<parallel>], iteration_bounds = array<i64: 1>, scalar_prefetch = 0 : i64, scratch_operands = 0 : i64, tpu.core_type = #tpu.core_type<tc>, window_params = [{transform_indices = @transform_0, window_bounds = array<i64: 256, 32>}, {transform_indices = @transform_1, window_bounds = array<i64: 256, 32>}, {pipeline_mode = #tpu.pipeline_mode<synchronous>, transform_indices = @transform_2, window_bounds = array<i64: 32, 128>}, {pipeline_mode = #tpu.pipeline_mode<synchronous>, transform_indices = @transform_3, window_bounds = array<i64: 32, 128>}, {pipeline_mode = #tpu.pipeline_mode<synchronous>, transform_indices = @transform_4, window_bounds = array<i64: 128, 128>}, {pipeline_mode = #tpu.pipeline_mode<synchronous>, transform_indices = @transform_5, window_bounds = array<i64: 128, 128>}, {pipeline_mode = #tpu.pipeline_mode<synchronous>, transform_indices = @transform_6, window_bounds = array<i64: 128, 128>}, {pipeline_mode = #tpu.pipeline_mode<synchronous>, transform_indices = @transform_7, window_bounds = array<i64: 128, 128>}, {pipeline_mode = #tpu.pipeline_mode<synchronous>, transform_indices = @transform_8, window_bounds = array<i64: 128, 128>}, {pipeline_mode = #tpu.pipeline_mode<synchronous>, transform_indices = @transform_9, window_bounds = array<i64: 8, 128>}, {transform_indices = @transform_10, window_bounds = array<i64: 256, 128>}]} {
    %c0 = arith.constant 0 : index
    %c0_0 = arith.constant 0 : index
    %0 = vector.load %arg10[%c0, %c0_0] : memref<8x128xf32, #tpu.memory_space<vmem>>, vector<8x128xf32>
    %1 = vector.extract_strided_slice %0 {offsets = [0, 0], sizes = [1, 128], strides = [1, 1]} : vector<8x128xf32> to vector<1x128xf32>
    %2 = vector.extract_strided_slice %0 {offsets = [1, 0], sizes = [1, 128], strides = [1, 1]} : vector<8x128xf32> to vector<1x128xf32>
    %3 = vector.extract_strided_slice %0 {offsets = [2, 0], sizes = [1, 128], strides = [1, 1]} : vector<8x128xf32> to vector<1x128xf32>
    %4 = vector.extract_strided_slice %0 {offsets = [3, 0], sizes = [1, 128], strides = [1, 1]} : vector<8x128xf32> to vector<1x128xf32>
    %5 = vector.extract_strided_slice %0 {offsets = [4, 0], sizes = [1, 128], strides = [1, 1]} : vector<8x128xf32> to vector<1x128xf32>
    %6 = vector.extract_strided_slice %0 {offsets = [5, 0], sizes = [1, 128], strides = [1, 1]} : vector<8x128xf32> to vector<1x128xf32>
    %c0_1 = arith.constant 0 : index
    %c0_2 = arith.constant 0 : index
    %7 = vector.load %arg1[%c0_1, %c0_2] : memref<256x32xf32, #tpu.memory_space<vmem>>, vector<256x32xf32>
    %8 = arith.truncf %7 : vector<256x32xf32> to vector<256x32xbf16>
    %c0_3 = arith.constant 0 : index
    %c0_4 = arith.constant 0 : index
    %9 = vector.load %arg2[%c0_3, %c0_4] : memref<256x32xf32, #tpu.memory_space<vmem>>, vector<256x32xf32>
    %10 = arith.truncf %9 : vector<256x32xf32> to vector<256x32xbf16>
    %c0_5 = arith.constant 0 : index
    %c0_6 = arith.constant 0 : index
    %11 = vector.load %arg3[%c0_5, %c0_6] : memref<32x128xbf16, #tpu.memory_space<vmem>>, vector<32x128xbf16>
    %cst = arith.constant dense<0.000000e+00> : vector<256x128xf32>
    %12 = tpu.matmul %8, %11, %cst {dimension_numbers = #tpu.dot_dimension_numbers<[1], [0], [0], [1], [0, 0, 1, 1], [], []>} : vector<256x32xbf16>, vector<32x128xbf16>, vector<256x128xf32> -> vector<256x128xf32>
    %c0_7 = arith.constant 0 : index
    %c0_8 = arith.constant 0 : index
    %13 = vector.load %arg4[%c0_7, %c0_8] : memref<32x128xbf16, #tpu.memory_space<vmem>>, vector<32x128xbf16>
    %cst_9 = arith.constant dense<0.000000e+00> : vector<256x128xf32>
    %14 = tpu.matmul %10, %13, %cst_9 {dimension_numbers = #tpu.dot_dimension_numbers<[1], [0], [0], [1], [0, 0, 1, 1], [], []>} : vector<256x32xbf16>, vector<32x128xbf16>, vector<256x128xf32> -> vector<256x128xf32>
    %15 = arith.addf %12, %14 : vector<256x128xf32>
    %16 = vector.broadcast %1 : vector<1x128xf32> to vector<256x128xf32>
    %17 = arith.addf %15, %16 : vector<256x128xf32>
    %cst_10 = arith.constant 0.000000e+00 : f32
    %18 = vector.broadcast %cst_10 : f32 to vector<256x128xf32>
    %19 = arith.maximumf %17, %18 : vector<256x128xf32>
    %20 = arith.truncf %19 : vector<256x128xf32> to vector<256x128xbf16>
    %c0_11 = arith.constant 0 : index
    %c0_12 = arith.constant 0 : index
    %21 = vector.load %arg5[%c0_11, %c0_12] : memref<128x128xbf16, #tpu.memory_space<vmem>>, vector<128x128xbf16>
    %cst_13 = arith.constant dense<0.000000e+00> : vector<256x128xf32>
    %22 = tpu.matmul %20, %21, %cst_13 {dimension_numbers = #tpu.dot_dimension_numbers<[1], [0], [0], [1], [0, 0, 1, 1], [], []>} : vector<256x128xbf16>, vector<128x128xbf16>, vector<256x128xf32> -> vector<256x128xf32>
    %23 = vector.broadcast %2 : vector<1x128xf32> to vector<256x128xf32>
    %24 = arith.addf %22, %23 : vector<256x128xf32>
    %cst_14 = arith.constant 0.000000e+00 : f32
    %25 = vector.broadcast %cst_14 : f32 to vector<256x128xf32>
    %26 = arith.maximumf %24, %25 : vector<256x128xf32>
    %27 = arith.truncf %26 : vector<256x128xf32> to vector<256x128xbf16>
    %c0_15 = arith.constant 0 : index
    %c0_16 = arith.constant 0 : index
    %28 = vector.load %arg6[%c0_15, %c0_16] : memref<128x128xbf16, #tpu.memory_space<vmem>>, vector<128x128xbf16>
    %cst_17 = arith.constant dense<0.000000e+00> : vector<256x128xf32>
    %29 = tpu.matmul %27, %28, %cst_17 {dimension_numbers = #tpu.dot_dimension_numbers<[1], [0], [0], [1], [0, 0, 1, 1], [], []>} : vector<256x128xbf16>, vector<128x128xbf16>, vector<256x128xf32> -> vector<256x128xf32>
    %30 = vector.broadcast %3 : vector<1x128xf32> to vector<256x128xf32>
    %31 = arith.addf %29, %30 : vector<256x128xf32>
    %32 = arith.addf %17, %31 : vector<256x128xf32>
    %cst_18 = arith.constant 0.000000e+00 : f32
    %33 = vector.broadcast %cst_18 : f32 to vector<256x128xf32>
    %34 = arith.maximumf %32, %33 : vector<256x128xf32>
    %35 = arith.truncf %34 : vector<256x128xf32> to vector<256x128xbf16>
    %c0_19 = arith.constant 0 : index
    %c0_20 = arith.constant 0 : index
    %36 = vector.load %arg7[%c0_19, %c0_20] : memref<128x128xbf16, #tpu.memory_space<vmem>>, vector<128x128xbf16>
    %cst_21 = arith.constant dense<0.000000e+00> : vector<256x128xf32>
    %37 = tpu.matmul %35, %36, %cst_21 {dimension_numbers = #tpu.dot_dimension_numbers<[1], [0], [0], [1], [0, 0, 1, 1], [], []>} : vector<256x128xbf16>, vector<128x128xbf16>, vector<256x128xf32> -> vector<256x128xf32>
    %38 = vector.broadcast %4 : vector<1x128xf32> to vector<256x128xf32>
    %39 = arith.addf %37, %38 : vector<256x128xf32>
    %cst_22 = arith.constant 0.000000e+00 : f32
    %40 = vector.broadcast %cst_22 : f32 to vector<256x128xf32>
    %41 = arith.maximumf %39, %40 : vector<256x128xf32>
    %42 = arith.truncf %41 : vector<256x128xf32> to vector<256x128xbf16>
    %c0_23 = arith.constant 0 : index
    %c0_24 = arith.constant 0 : index
    %43 = vector.load %arg8[%c0_23, %c0_24] : memref<128x128xbf16, #tpu.memory_space<vmem>>, vector<128x128xbf16>
    %cst_25 = arith.constant dense<0.000000e+00> : vector<256x128xf32>
    %44 = tpu.matmul %42, %43, %cst_25 {dimension_numbers = #tpu.dot_dimension_numbers<[1], [0], [0], [1], [0, 0, 1, 1], [], []>} : vector<256x128xbf16>, vector<128x128xbf16>, vector<256x128xf32> -> vector<256x128xf32>
    %45 = vector.broadcast %5 : vector<1x128xf32> to vector<256x128xf32>
    %46 = arith.addf %44, %45 : vector<256x128xf32>
    %47 = arith.addf %32, %46 : vector<256x128xf32>
    %cst_26 = arith.constant 0.000000e+00 : f32
    %48 = vector.broadcast %cst_26 : f32 to vector<256x128xf32>
    %49 = arith.maximumf %47, %48 : vector<256x128xf32>
    %50 = arith.truncf %49 : vector<256x128xf32> to vector<256x128xbf16>
    %c0_27 = arith.constant 0 : index
    %c0_28 = arith.constant 0 : index
    %51 = vector.load %arg9[%c0_27, %c0_28] : memref<128x128xbf16, #tpu.memory_space<vmem>>, vector<128x128xbf16>
    %cst_29 = arith.constant dense<0.000000e+00> : vector<256x128xf32>
    %52 = tpu.matmul %50, %51, %cst_29 {dimension_numbers = #tpu.dot_dimension_numbers<[1], [0], [0], [1], [0, 0, 1, 1], [], []>} : vector<256x128xbf16>, vector<128x128xbf16>, vector<256x128xf32> -> vector<256x128xf32>
    %53 = vector.broadcast %6 : vector<1x128xf32> to vector<256x128xf32>
    %54 = arith.addf %52, %53 : vector<256x128xf32>
    %55 = arith.truncf %54 : vector<256x128xf32> to vector<256x128xbf16>
    %c0_30 = arith.constant 0 : index
    %c0_31 = arith.constant 0 : index
    %56 = vector.load %arg11[%c0_30, %c0_31] : memref<256x128xbf16, #tpu.memory_space<vmem>>, vector<256x128xbf16>
    tpu.vector_store %arg11[%c0_30, %c0_31], %55 {strides = array<i32>} : memref<256x128xbf16, #tpu.memory_space<vmem>>, vector<256x128xbf16>,
    return
  }
  func.func @transform_0(%arg0: i32) -> (i32, i32) {
    %c0_i32 = arith.constant 0 : i32
    %c0_i32_0 = arith.constant 0 : i32
    return %arg0, %c0_i32 : i32, i32
  }
  func.func @transform_1(%arg0: i32) -> (i32, i32) {
    %c0_i32 = arith.constant 0 : i32
    %c0_i32_0 = arith.constant 0 : i32
    return %arg0, %c0_i32 : i32, i32
  }
  func.func @transform_2(%arg0: i32) -> (i32, i32) {
    %c0_i32 = arith.constant 0 : i32
    %c0_i32_0 = arith.constant 0 : i32
    %c0_i32_1 = arith.constant 0 : i32
    return %c0_i32, %c0_i32_0 : i32, i32
  }
  func.func @transform_3(%arg0: i32) -> (i32, i32) {
    %c0_i32 = arith.constant 0 : i32
    %c0_i32_0 = arith.constant 0 : i32
    %c0_i32_1 = arith.constant 0 : i32
    return %c0_i32, %c0_i32_0 : i32, i32
  }
  func.func @transform_4(%arg0: i32) -> (i32, i32) {
    %c0_i32 = arith.constant 0 : i32
    %c0_i32_0 = arith.constant 0 : i32
    %c0_i32_1 = arith.constant 0 : i32
    return %c0_i32, %c0_i32_0 : i32, i32
  }
  func.func @transform_5(%arg0: i32) -> (i32, i32) {
    %c0_i32 = arith.constant 0 : i32
    %c0_i32_0 = arith.constant 0 : i32
    %c0_i32_1 = arith.constant 0 : i32
    return %c0_i32, %c0_i32_0 : i32, i32
  }
  func.func @transform_6(%arg0: i32) -> (i32, i32) {
    %c0_i32 = arith.constant 0 : i32
    %c0_i32_0 = arith.constant 0 : i32
    %c0_i32_1 = arith.constant 0 : i32
    return %c0_i32, %c0_i32_0 : i32, i32
  }
  func.func @transform_7(%arg0: i32) -> (i32, i32) {
    %c0_i32 = arith.constant 0 : i32
    %c0_i32_0 = arith.constant 0 : i32
    %c0_i32_1 = arith.constant 0 : i32
    return %c0_i32, %c0_i32_0 : i32, i32
  }
  func.func @transform_8(%arg0: i32) -> (i32, i32) {
    %c0_i32 = arith.constant 0 : i32
    %c0_i32_0 = arith.constant 0 : i32
    %c0_i32_1 = arith.constant 0 : i32
    return %c0_i32, %c0_i32_0 : i32, i32
  }
  func.func @transform_9(%arg0: i32) -> (i32, i32) {
    %c0_i32 = arith.constant 0 : i32
    %c0_i32_0 = arith.constant 0 : i32
    %c0_i32_1 = arith.constant 0 : i32
    return %c0_i32, %c0_i32_0 : i32, i32
  }
  func.func @transform_10(%arg0: i32) -> (i32, i32) {
    %c0_i32 = arith.constant 0 : i32
    %c0_i32_0 = arith.constant 0 : i32
    return %arg0, %c0_i32 : i32, i32
  }
}

</mosaic_0001>

<bundles_post_ra>
// kernel: angle_head_forward.1
= control target key start
LH: loop header
LB: loop body
LE: loop exit
PB: predicated region body
PF: predicated region fallthrough
CT: control target
= control target key end

     0   :  { %15 = vsyncpa [#allocation3], 0  ;;  %s3079_s0 = inlined_call_operand.hbm [shape: f32[16,32], index: 0, kind: input, shape index: {}]   ;;  %s3080_s1 = inlined_call_operand.hbm [shape: f32[16,32], index: 1, kind: input, shape index: {}]   ;;  %s3081_s2 = inlined_call_operand.hbm [shape: bf16[32,128], index: 2, kind: input, shape index: {}]   ;;  %s3082_s3 = inlined_call_operand.hbm [shape: bf16[32,128], index: 3, kind: input, shape index: {}]   ;;  %s3083_s4 = inlined_call_operand.hbm [shape: bf16[128,128], index: 4, kind: input, shape index: {}]   ;;  %s3084_s5 = inlined_call_operand.hbm [shape: bf16[128,128], index: 5, kind: input, shape index: {}]   ;;  %s3085_s6 = inlined_call_operand.hbm [shape: bf16[128,128], index: 6, kind: input, shape index: {}]   ;;  %s3086_s7 = inlined_call_operand.hbm [shape: bf16[128,128], index: 7, kind: input, shape index: {}]   ;;  %s3087_s8 = inlined_call_operand.hbm [shape: bf16[128,128], index: 8, kind: input, shape index: {}]   ;;  %s3088_s9 = inlined_call_operand.hbm [shape: f32[8,128], index: 9, kind: input, shape index: {}]   ;;  %s3089_s10 = inlined_call_operand.vmem [shape: bf16[16,128], index: 10, kind: output, shape index: {}]  }
   0x1   :  { %16 = vsyncpa [#allocation5], 0 }
   0x2   :  { %17 = vsyncpa [#allocation8], 0 }
   0x3   :  { %18 = vsyncpa [#allocation11], 0 }
   0x4   :  { %19 = vsyncpa [#allocation14], 0 }
   0x5   :  { %20 = vsyncpa [#allocation17], 0 }
   0x6   :  { %24 = vsyncadd [#allocation3], 3840  ;;  %s25_s15 = sshll.u32 %s3079_s0, 4  ;;  %s2458_s16 = smov [#allocation2]   ;;  %s26_s15 = int_to_ptr.hbm [resolvable:$true] %s25_s15 }
   0x7   :  { %s27_s17 = sshll.u32 %s2458_s16, 4  ;;  %s2459_s18 = smov 128   ;;  %s28_s17 = int_to_ptr.vmem [resolvable:$true] %s27_s17 }
   0x8   :  { %s2460_s19 = smov 8  }
   0x9   :  { %33 = dma.hbm_to_vmem [thread:$0]  %s26_s15, 256, %s28_s17, [#allocation3], %s2459_s18, %s2459_s18, %s2460_s19  }
   0xa   :  { %37 = vsyncadd [#allocation5], 3840  ;;  %s38_s22 = sshll.u32 %s3080_s1, 4  ;;  %s2461_s23 = smov [#allocation4]   ;;  %s39_s22 = int_to_ptr.hbm [resolvable:$true] %s38_s22 }
   0xb   :  { %s40_s24 = sshll.u32 %s2461_s23, 4  ;;  %s64_s0 = sshll.u32 %s3082_s3, 4  ;;  %s41_s24 = int_to_ptr.vmem [resolvable:$true] %s40_s24  ;;  %s65_s0 = int_to_ptr.hbm [resolvable:$true] %s64_s0 }
   0xc   :  { %46 = dma.hbm_to_vmem [thread:$0]  %s39_s22, 256, %s41_s24, [#allocation5], %s2459_s18, %s2459_s18, %s2460_s19  }
   0xd   :  { %s2462_s27 = smov [#allocation7]   ;;  %s90_s11 = sshll.u32 %s3084_s5, 4  ;;  %s91_s11 = int_to_ptr.hbm [resolvable:$true] %s90_s11 }
   0xe   :  { %s66_s28 = sshll.u32 %s2462_s27, 4  ;;  %s2463_s12 = smov 64   ;;  %s67_s28 = int_to_ptr.vmem [resolvable:$true] %s66_s28 }
   0xf   :  { %s2464_s1 = smov 4   ;;  %s116_s15 = sshll.u32 %s3086_s7, 4  ;;  %s117_s15 = int_to_ptr.hbm [resolvable:$true] %s116_s15 }
  0x10   :  { %72 = dma.hbm_to_vmem [thread:$0]  %s65_s0, 256, %s67_s28, [#allocation8], %s2463_s12, %s2463_s12, %s2464_s1  }
  0x11   :  { %s2465_s3 = smov [#allocation10]   ;;  %s2466_s5 = smov [#allocation13]  }
  0x12   :  { %s92_s16 = sshll.u32 %s2465_s3, 4  ;;  %s118_s17 = sshll.u32 %s2466_s5, 4  ;;  %s93_s16 = int_to_ptr.vmem [resolvable:$true] %s92_s16  ;;  %s119_s17 = int_to_ptr.vmem [resolvable:$true] %s118_s17 }
  0x13   :  { %98 = dma.hbm_to_vmem [thread:$0]  %s91_s11, 1024, %s93_s16, [#allocation11], %s2463_s12, %s2463_s12, %s2464_s1  }
  0x14   :  { %s51_s20 = sshll.u32 %s3081_s2, 4  ;;  %s77_s22 = sshll.u32 %s3083_s4, 4  ;;  %s52_s20 = int_to_ptr.hbm [resolvable:$true] %s51_s20  ;;  %s78_s22 = int_to_ptr.hbm [resolvable:$true] %s77_s22 }
  0x15   :  { %124 = dma.hbm_to_vmem [thread:$0]  %s117_s15, 1024, %s119_s17, [#allocation14], %s2463_s12, %s2463_s12, %s2464_s1  }
  0x16   :  { %s2467_s23 = smov [#allocation6]   ;;  %s2468_s25 = smov [#allocation9]  }
  0x17   :  { %s53_s24 = sshll.u32 %s2467_s23, 4  ;;  %s79_s2 = sshll.u32 %s2468_s25, 4  ;;  %s54_s24 = int_to_ptr.vmem [resolvable:$true] %s53_s24  ;;  %s80_s2 = int_to_ptr.vmem [resolvable:$true] %s79_s2 }
  0x18   :  { %59 = dma.hbm_to_vmem [thread:$0]  %s52_s20, 256, %s54_s24, [#allocation5], %s2463_s12, %s2463_s12, %s2464_s1  }
  0x19   :  { %s103_s27 = sshll.u32 %s3085_s6, 4  ;;  %s129_s29 = sshll.u32 %s3087_s8, 4  ;;  %s104_s27 = int_to_ptr.hbm [resolvable:$true] %s103_s27  ;;  %s130_s29 = int_to_ptr.hbm [resolvable:$true] %s129_s29 }
  0x1a   :  { %85 = dma.hbm_to_vmem [thread:$0]  %s78_s22, 1024, %s80_s2, [#allocation8], %s2463_s12, %s2463_s12, %s2464_s1  }
  0x1b   :  { %s2469_s30 = smov [#allocation12]   ;;  %s2470_s13 = smov [#allocation15]  }
  0x1c   :  { %s105_s11 = sshll.u32 %s2469_s30, 4  ;;  %s131_s6 = sshll.u32 %s2470_s13, 4  ;;  %s106_s11 = int_to_ptr.vmem [resolvable:$true] %s105_s11  ;;  %s132_s6 = int_to_ptr.vmem [resolvable:$true] %s131_s6 }
  0x1d   :  { %111 = dma.hbm_to_vmem [thread:$0]  %s104_s27, 1024, %s106_s11, [#allocation11], %s2463_s12, %s2463_s12, %s2464_s1  }
  0x1e   :  { %s143_s3 = sshll.u32 %s3088_s9, 4  ;;  %s2471_s8 = smov [#allocation16]   ;;  %s144_s3 = int_to_ptr.hbm [resolvable:$true] %s143_s3 }
  0x1f   :  { %137 = dma.hbm_to_vmem [thread:$0]  %s130_s29, 1024, %s132_s6, [#allocation14], %s2463_s12, %s2463_s12, %s2464_s1  }
  0x20   :  { %s145_s16 = sshll.u32 %s2471_s8, 4  ;;  %s146_s16 = int_to_ptr.vmem [resolvable:$true] %s145_s16 }
  0x21   :  { %148 = dma.hbm_to_vmem [thread:$0]  %s144_s3, 128, %s146_s16, [#allocation17]  }
  0x22   :  { %2446 = dma.done.wait [#allocation3], 4096  }
  0x23   :  { %2447 = vsyncadd [#allocation3], 4294963200 }
  0x24   :  { %2448 = dma.done.wait [#allocation5], 4352  }
  0x25   :  { %2449 = vsyncadd [#allocation5], 4294962944 }
  0x26   :  { %2450 = dma.done.wait [#allocation8], 1280  }
  0x27   :  { %2451 = vsyncadd [#allocation8], 4294966016 }
  0x28   :  { %2452 = dma.done.wait [#allocation11], 2048  }
  0x29   :  { %2453 = vsyncadd [#allocation11], 4294965248 }
  0x2a   :  { %2454 = dma.done.wait [#allocation14], 2048  }
  0x2b   :  { %2455 = vsyncadd [#allocation14], 4294965248 }
  0x2c   :  { %2456 = dma.done.wait [#allocation17], 128  }
  0x2d   :  { %2457 = vsyncadd [#allocation17], 4294967168  ;;  %v2035_v0 = vld [vmem:[#allocation7 + $0x8] sm:$0xff]  ;;  %v2033_v1 = vld [vmem:[#allocation6 + $0x8] sm:$0xff]  ;;  %vm307_vm0 = vcmask 261120  }
  0x2e   :  { %v2034_v2 = vld [vmem:[#allocation7] sm:$0xff]  ;;  %v2032_v3 = vld [vmem:[#allocation6] sm:$0xff]  ;;  %362 = vmatpush.bf16.msra.mxu0 %v2035_v0  ;;  %511 = vmatpush.bf16.msra.mxu1 %v2033_v1  ;;  %v240_v5 = vld [vmem:[#allocation4 + $0x8] sm:$0xff] }
  0x2f   :  { %v239_v4 = vld [vmem:[#allocation4] sm:$0xff]  ;;  %v192_v7 = vld [vmem:[#allocation2 + $0x8] sm:$0xff]  ;;  %2171 = vmatpush.bf16.msra.mxu3 %v2035_v0  ;;  %v241_v10 = vld [vmem:[#allocation4 + $0x10] sm:$0xff] }
  0x30   :  { %v191_v6 = vld [vmem:[#allocation2] sm:$0xff]  ;;  %v271_v8 = vpack.c.bf16 %v240_v5, %v239_v4  ;;  %v242_v11 = vld [vmem:[#allocation4 + $0x18] sm:$0xff]  ;;  %v193_v12 = vld [vmem:[#allocation2 + $0x10] sm:$0xff] }
  0x31   :  { %v223_v9 = vpack.c.bf16 %v192_v7, %v191_v6  ;;  %v194_v13 = vld [vmem:[#allocation2 + $0x18] sm:$0xff]  ;;  %v272_v14 = vpack.c.bf16 %v242_v11, %v241_v10  ;;  %v243_v16 = vld [vmem:[#allocation4 + $0x20] sm:$0xff]  ;;  %v244_v17 = vld [vmem:[#allocation4 + $0x28] sm:$0xff] }
  0x32   :  { %363 = vmatpush.bf16.msra.mxu0 %v2034_v2  ;;  %512 = vmatpush.bf16.msra.mxu1 %v2032_v3  ;;  %v224_v15 = vpack.c.bf16 %v194_v13, %v193_v12  ;;  %v195_v18 = vld [vmem:[#allocation2 + $0x20] sm:$0xff]  ;;  %v196_v19 = vld [vmem:[#allocation2 + $0x28] sm:$0xff]  ;;  %v273_v20 = vpack.c.bf16 %v244_v17, %v243_v16  ;;  %v245_v22 = vld [vmem:[#allocation4 + $0x30] sm:$0xff] }
  0x33   :  { %2172 = vmatpush.bf16.msra.mxu3 %v2034_v2  ;;  %v225_v21 = vpack.c.bf16 %v196_v19, %v195_v18  ;;  %v246_v23 = vld [vmem:[#allocation4 + $0x38] sm:$0xff]  ;;  %v197_v24 = vld [vmem:[#allocation2 + $0x30] sm:$0xff]  ;;  %v247_v28 = vld [vmem:[#allocation4 + $0x40] sm:$0xff] }
  0x34   :  { %v198_v25 = vld [vmem:[#allocation2 + $0x38] sm:$0xff]  ;;  %v274_v26 = vpack.c.bf16 %v246_v23, %v245_v22  ;;  %v248_v29 = vld [vmem:[#allocation4 + $0x48] sm:$0xff]  ;;  %v199_v30 = vld [vmem:[#allocation2 + $0x40] sm:$0xff] }
  0x35   :  { %1832 = vmatmul.msk.bf16.vlgmr.msra.gmra.mxu0 %vm307_vm0, %v271_v8  ;;  %1856 = vmatmul.msk.bf16.vlgmr.msra.gmra.mxu1 %vm307_vm0, %v223_v9  ;;  %v226_v27 = vpack.c.bf16 %v198_v25, %v197_v24  ;;  %v200_v31 = vld [vmem:[#allocation2 + $0x48] sm:$0xff]  ;;  %v275_v32 = vpack.c.bf16 %v248_v29, %v247_v28  ;;  %v265_v34 = vld [vmem:[#allocation4 + $0xd0] sm:$0xff]  ;;  %v266_v35 = vld [vmem:[#allocation4 + $0xd8] sm:$0xff] }
  0x36   :  { %v227_v33 = vpack.c.bf16 %v200_v31, %v199_v30  ;;  %v284_v36 = vpack.c.bf16 %v266_v35, %v265_v34  ;;  %v2043_v37 = vld [vmem:[#allocation9 + $0x38] sm:$0xff]  ;;  %v249_v38 = vld [vmem:[#allocation4 + $0x50] sm:$0xff]  ;;  %v267_v44 = vld [vmem:[#allocation4 + $0xe0] sm:$0xff] }
  0x37   :  { %2173 = vmatpush.bf16.msrb.mxu3 %v2033_v1  ;;  %740 = vmatpush.bf16.msra.mxu2 %v2043_v37  ;;  %v250_v39 = vld [vmem:[#allocation4 + $0x58] sm:$0xff]  ;;  %v201_v40 = vld [vmem:[#allocation2 + $0x50] sm:$0xff]  ;;  %v268_v45 = vld [vmem:[#allocation4 + $0xe8] sm:$0xff] }
  0x38   :  { %1845 = vmatmul.msk.bf16.vlgmr.msra.gmra.mxu3 %vm307_vm0, %v284_v36  ;;  %v202_v41 = vld [vmem:[#allocation2 + $0x58] sm:$0xff]  ;;  %v276_v42 = vpack.c.bf16 %v250_v39, %v249_v38  ;;  %v285_v46 = vpack.c.bf16 %v268_v45, %v267_v44  ;;  %v2042_v47 = vld [vmem:[#allocation9 + $0x30] sm:$0xff]  ;;  %v2041_v48 = vld [vmem:[#allocation9 + $0x28] sm:$0xff] }
  0x39   :  { %v228_v43 = vpack.c.bf16 %v202_v41, %v201_v40  ;;  %v2040_v49 = vld [vmem:[#allocation9 + $0x20] sm:$0xff]  ;;  %v252_v51 = vld [vmem:[#allocation4 + $0x68] sm:$0xff]  ;;  %v2039_v56 = vld [vmem:[#allocation9 + $0x18] sm:$0xff] }
  0x3a   :  { %v251_v50 = vld [vmem:[#allocation4 + $0x60] sm:$0xff]  ;;  %v204_v53 = vld [vmem:[#allocation2 + $0x68] sm:$0xff]  ;;  %v269_v57 = vld [vmem:[#allocation4 + $0xf0] sm:$0xff] }
  0x3b   :  { %2174 = vmatpush.bf16.msrb.mxu3 %v2032_v3  ;;  %741 = vmatpush.bf16.msra.mxu2 %v2042_v47  ;;  %v203_v52 = vld [vmem:[#allocation2 + $0x60] sm:$0xff]  ;;  %v277_v54 = vpack.c.bf16 %v252_v51, %v251_v50  ;;  %v270_v58 = vld [vmem:[#allocation4 + $0xf8] sm:$0xff]  ;;  %v2038_v60 = vld [vmem:[#allocation9 + $0x10] sm:$0xff] }
  0x3c   :  { %v229_v55 = vpack.c.bf16 %v204_v53, %v203_v52  ;;  %v286_v59 = vpack.c.bf16 %v270_v58, %v269_v57  ;;  %v2037_v61 = vld [vmem:[#allocation9 + $0x8] sm:$0xff]  ;;  %v253_v62 = vld [vmem:[#allocation4 + $0x70] sm:$0xff]  ;;  %v2036_v63 = vld [vmem:[#allocation9] sm:$0xff] }
  0x3d   :  { %v254_v0 = vld [vmem:[#allocation4 + $0x78] sm:$0xff]  ;;  %v205_v1 = vld [vmem:[#allocation2 + $0x70] sm:$0xff]  ;;  %v255_v8 = vld [vmem:[#allocation4 + $0x80] sm:$0xff] }
  0x3e   :  { %v206_v2 = vld [vmem:[#allocation2 + $0x78] sm:$0xff]  ;;  %v278_v3 = vpack.c.bf16 %v254_v0, %v253_v62  ;;  %v217_v5 = vld [vmem:[#allocation2 + $0xd0] sm:$0xff]  ;;  %v256_v9 = vld [vmem:[#allocation4 + $0x88] sm:$0xff] }
  0x3f   :  { %2175 = vmatpush.bf16.msra.mxu3 %v2043_v37  ;;  %742 = vmatpush.bf16.msra.mxu2 %v2041_v48  ;;  %v230_v4 = vpack.c.bf16 %v206_v2, %v205_v1  ;;  %v218_v6 = vld [vmem:[#allocation2 + $0xd8] sm:$0xff]  ;;  %v207_v10 = vld [vmem:[#allocation2 + $0x80] sm:$0xff]  ;;  %v208_v11 = vld [vmem:[#allocation2 + $0x88] sm:$0xff]  ;;  %v279_v12 = vpack.c.bf16 %v256_v9, %v255_v8 }
  0x40   :  { %v236_v7 = vpack.c.bf16 %v218_v6, %v217_v5  ;;  %v231_v13 = vpack.c.bf16 %v208_v11, %v207_v10  ;;  %v2598_v16 = vld [vmem:[#allocation16] sm:$0xff]  ;;  %v220_v18 = vld [vmem:[#allocation2 + $0xe8] sm:$0xff]  ;;  %v258_v28 = vld [vmem:[#allocation4 + $0x98] sm:$0xff] }
  0x41   :  { %v219_v17 = vld [vmem:[#allocation2 + $0xe0] sm:$0xff]  ;;  %v209_v29 = vld [vmem:[#allocation2 + $0x90] sm:$0xff]  ;;  %v210_v30 = vld [vmem:[#allocation2 + $0x98] sm:$0xff] }
  0x42   :  { %v237_v19 = vpack.c.bf16 %v220_v18, %v219_v17  ;;  %v232_v35 = vpack.c.bf16 %v210_v30, %v209_v29  ;;  %v221_v38 = vld [vmem:[#allocation2 + $0xf0] sm:$0xff]  ;;  %v222_v39 = vld [vmem:[#allocation2 + $0xf8] sm:$0xff]  ;;  %v212_v50 = vld [vmem:[#allocation2 + $0xa8] sm:$0xff] }
  0x43   :  { %2176 = vmatpush.bf16.msra.mxu3 %v2042_v47  ;;  %743 = vmatpush.bf16.msra.mxu2 %v2040_v49  ;;  %v238_v40 = vpack.c.bf16 %v222_v39, %v221_v38  ;;  %v259_v47 = vld [vmem:[#allocation4 + $0xa0] sm:$0xff]  ;;  %v261_v0 = vld [vmem:[#allocation4 + $0xb0] sm:$0xff]  ;;  %v262_v1 = vld [vmem:[#allocation4 + $0xb8] sm:$0xff] }
  0x44   :  { %v213_v2 = vld [vmem:[#allocation2 + $0xb0] sm:$0xff]  ;;  %v263_v18 = vld [vmem:[#allocation4 + $0xc0] sm:$0xff] }
  0x45   :  { %1833 = vmatmul.msk.bf16.gmra.mxu0 %vm307_vm0, %v272_v14  ;;  %1857 = vmatmul.msk.bf16.gmra.mxu1 %vm307_vm0, %v224_v15 }
  0x47   :  { %2177 = vmatpush.bf16.msra.mxu3 %v2041_v48  ;;  %744 = vmatpush.bf16.msra.mxu2 %v2039_v56  ;;  %v260_v48 = vld [vmem:[#allocation4 + $0xa8] sm:$0xff] }
  0x48   :  { %1846 = vmatmul.msk.bf16.gmra.mxu3 %vm307_vm0, %v285_v46 }
  0x4b   :  { %2178 = vmatpush.bf16.msra.mxu3 %v2040_v49  ;;  %745 = vmatpush.bf16.msra.mxu2 %v2038_v60  ;;  %v211_v49 = vld [vmem:[#allocation2 + $0xa0] sm:$0xff] }
  0x4f   :  { %2179 = vmatpush.bf16.msra.mxu3 %v2039_v56  ;;  %746 = vmatpush.bf16.msra.mxu2 %v2037_v61 }
  0x53   :  { %2180 = vmatpush.bf16.msra.mxu3 %v2038_v60  ;;  %747 = vmatpush.bf16.msra.mxu2 %v2036_v63 }
  0x55   :  { %1834 = vmatmul.msk.bf16.gmra.mxu0 %vm307_vm0, %v273_v20  ;;  %1858 = vmatmul.msk.bf16.gmra.mxu1 %vm307_vm0, %v225_v21  ;;  %v2603_v21 = vperm.slane %v2598_v16, 0 }
  0x57   :  { %2181 = vmatpush.bf16.msra.mxu3 %v2037_v61 }
  0x58   :  { %1847 = vmatmul.msk.bf16.gmra.mxu3 %vm307_vm0, %v286_v59 }
  0x5b   :  { %2182 = vmatpush.bf16.msra.mxu3 %v2036_v63 }
  0x65   :  { %1835 = vmatmul.msk.bf16.gmra.mxu0 %vm307_vm0, %v274_v26  ;;  %1859 = vmatmul.msk.bf16.gmra.mxu1 %vm307_vm0, %v226_v27  ;;  %v257_v27 = vld [vmem:[#allocation4 + $0x90] sm:$0xff] }
  0x66   :  { %v280_v34 = vpack.c.bf16 %v258_v28, %v257_v27 }
  0x68   :  { %1869 = vmatmul.msk.bf16.vlgmr.msrb.gmra.mxu3 %vm307_vm0, %v236_v7  ;;  %v282_v7 = vpack.c.bf16 %v262_v1, %v261_v0 }
  0x75   :  { %1836 = vmatmul.msk.bf16.gmra.mxu0 %vm307_vm0, %v275_v32  ;;  %1860 = vmatmul.msk.bf16.gmra.mxu1 %vm307_vm0, %v227_v33 }
  0x78   :  { %1870 = vmatmul.msk.bf16.gmra.mxu3 %vm307_vm0, %v237_v19  ;;  %v264_v19 = vld [vmem:[#allocation4 + $0xc8] sm:$0xff] }
  0x79   :  { %v283_v28 = vpack.c.bf16 %v264_v19, %v263_v18 }
  0x85   :  { %1837 = vmatmul.msk.bf16.gmra.mxu0 %vm307_vm0, %v276_v42  ;;  %1861 = vmatmul.msk.bf16.gmra.mxu1 %vm307_vm0, %v228_v43 }
  0x88   :  { %1871 = vmatmul.msk.bf16.gmra.mxu3 %vm307_vm0, %v238_v40 }
  0x95   :  { %1838 = vmatmul.msk.bf16.gmra.mxu0 %vm307_vm0, %v277_v54  ;;  %1862 = vmatmul.msk.bf16.gmra.mxu1 %vm307_vm0, %v229_v55  ;;  %v281_v54 = vpack.c.bf16 %v260_v48, %v259_v47  ;;  %v233_v55 = vpack.c.bf16 %v212_v50, %v211_v49 }
  0xa5   :  { %1839 = vmatmul.msk.bf16.gmra.mxu0 %vm307_vm0, %v278_v3  ;;  %1863 = vmatmul.msk.bf16.gmra.mxu1 %vm307_vm0, %v230_v4  ;;  %v214_v3 = vld [vmem:[#allocation2 + $0xb8] sm:$0xff] }
  0xa6   :  { %v234_v8 = vpack.c.bf16 %v214_v3, %v213_v2 }
  0xb2   :  { %v365_v14 = vpop.f32.mrf.mxu0  ;;  %v514_v15 = vpop.f32.mrf.mxu1 }
  0xb3   :  { %v515_v20 = vadd.f32 %v514_v15, %v365_v14 }
  0xb5   :  { %1840 = vmatmul.msk.bf16.gmra.mxu0 %vm307_vm0, %v279_v12  ;;  %1864 = vmatmul.msk.bf16.gmra.mxu1 %vm307_vm0, %v231_v13  ;;  %v2607_v24 = vadd.f32 %v2603_v21, %v515_v20  ;;  %v215_v20 = vld [vmem:[#allocation2 + $0xc0] sm:$0xff] }
  0xb7   :  { %v627_v31 = vmax.f32 %v2607_v24, 0.0 }
  0xba   :  { %v367_v22 = vpop.f32.mrf.mxu0  ;;  %v516_v23 = vpop.f32.mrf.mxu1 }
  0xbb   :  { %v517_v25 = vadd.f32 %v516_v23, %v367_v22  ;;  %v216_v22 = vld [vmem:[#allocation2 + $0xc8] sm:$0xff]  ;;  %v2679_v19 = vpop.f32.mrf.mxu3 }
  0xbc   :  { %v235_v29 = vpack.c.bf16 %v216_v22, %v215_v20 }
  0xbd   :  { %v2610_v26 = vadd.f32 %v2603_v21, %v517_v25 }
  0xbf   :  { %v628_v32 = vmax.f32 %v2610_v26, 0.0 }
  0xc1   :  { %v659_v33 = vpack.c.bf16 %v628_v32, %v627_v31 }
  0xc2   :  { %v370_v36 = vpop.f32.mrf.mxu0  ;;  %v519_v37 = vpop.f32.mrf.mxu1 }
  0xc3   :  { %748 = vmatmul.bf16.vlgmr.msra.gmra.mxu2 %v659_v33  ;;  %v520_v41 = vadd.f32 %v519_v37, %v370_v36 }
  0xc5   :  { %1841 = vmatmul.msk.bf16.gmra.mxu0 %vm307_vm0, %v280_v34  ;;  %1865 = vmatmul.msk.bf16.gmra.mxu1 %vm307_vm0, %v232_v35  ;;  %v2618_v44 = vadd.f32 %v2603_v21, %v520_v41 }
  0xc7   :  { %v629_v51 = vmax.f32 %v2618_v44, 0.0 }
  0xca   :  { %v372_v42 = vpop.f32.mrf.mxu0  ;;  %v521_v43 = vpop.f32.mrf.mxu1 }
  0xcb   :  { %v522_v45 = vadd.f32 %v521_v43, %v372_v42 }
  0xcd   :  { %v2621_v46 = vadd.f32 %v2603_v21, %v522_v45 }
  0xcf   :  { %v630_v52 = vmax.f32 %v2621_v46, 0.0 }
  0xd1   :  { %v660_v53 = vpack.c.bf16 %v630_v52, %v629_v51 }
  0xd2   :  { %v375_v56 = vpop.f32.mrf.mxu0  ;;  %v524_v57 = vpop.f32.mrf.mxu1 }
  0xd3   :  { %753 = vmatmul.bf16.gmra.mxu2 %v660_v53  ;;  %v525_v58 = vadd.f32 %v524_v57, %v375_v56 }
  0xd5   :  { %1842 = vmatmul.msk.bf16.gmra.mxu0 %vm307_vm0, %v281_v54  ;;  %1866 = vmatmul.msk.bf16.gmra.mxu1 %vm307_vm0, %v233_v55  ;;  %v2628_v61 = vadd.f32 %v2603_v21, %v525_v58 }
  0xd7   :  { %v631_v4 = vmax.f32 %v2628_v61, 0.0 }
  0xda   :  { %v377_v59 = vpop.f32.mrf.mxu0  ;;  %v526_v60 = vpop.f32.mrf.mxu1 }
  0xdb   :  { %v527_v62 = vadd.f32 %v526_v60, %v377_v59 }
  0xdd   :  { %v2631_v63 = vadd.f32 %v2603_v21, %v527_v62 }
  0xdf   :  { %v632_v5 = vmax.f32 %v2631_v63, 0.0 }
  0xe1   :  { %v661_v6 = vpack.c.bf16 %v632_v5, %v631_v4 }
  0xe2   :  { %v380_v9 = vpop.f32.mrf.mxu0  ;;  %v529_v10 = vpop.f32.mrf.mxu1 }
  0xe3   :  { %758 = vmatmul.bf16.gmra.mxu2 %v661_v6  ;;  %v530_v11 = vadd.f32 %v529_v10, %v380_v9 }
  0xe5   :  { %1843 = vmatmul.msk.bf16.gmra.mxu0 %vm307_vm0, %v282_v7  ;;  %1867 = vmatmul.msk.bf16.gmra.mxu1 %vm307_vm0, %v234_v8  ;;  %v2638_v14 = vadd.f32 %v2603_v21, %v530_v11 }
  0xe7   :  { %v633_v23 = vmax.f32 %v2638_v14, 0.0 }
  0xea   :  { %v382_v12 = vpop.f32.mrf.mxu0  ;;  %v531_v13 = vpop.f32.mrf.mxu1 }
  0xeb   :  { %v532_v15 = vadd.f32 %v531_v13, %v382_v12 }
  0xed   :  { %v2641_v17 = vadd.f32 %v2603_v21, %v532_v15 }
  0xef   :  { %v634_v25 = vmax.f32 %v2641_v17, 0.0 }
  0xf1   :  { %v662_v27 = vpack.c.bf16 %v634_v25, %v633_v23 }
  0xf2   :  { %v385_v30 = vpop.f32.mrf.mxu0  ;;  %v534_v31 = vpop.f32.mrf.mxu1 }
  0xf3   :  { %763 = vmatmul.bf16.gmra.mxu2 %v662_v27  ;;  %v535_v32 = vadd.f32 %v534_v31, %v385_v30 }
  0xf5   :  { %1844 = vmatmul.msk.bf16.gmra.mxu0 %vm307_vm0, %v283_v28  ;;  %1868 = vmatmul.msk.bf16.gmra.mxu1 %vm307_vm0, %v235_v29  ;;  %v2648_v35 = vadd.f32 %v2603_v21, %v535_v32  ;;  %v2684_v28 = vpop.f32.mrf.mxu3 }
  0xf7   :  { %v635_v38 = vmax.f32 %v2648_v35, 0.0 }
  0xfa   :  { %v387_v33 = vpop.f32.mrf.mxu0  ;;  %v536_v34 = vpop.f32.mrf.mxu1 }
  0xfb   :  { %v537_v36 = vadd.f32 %v536_v34, %v387_v33 }
  0xfd   :  { %v2651_v37 = vadd.f32 %v2603_v21, %v537_v36  ;;  %v2691_v36 = vpop.f32.mrf.mxu3 }
  0xff   :  { %v636_v39 = vmax.f32 %v2651_v37, 0.0 }
 0x101   :  { %v663_v40 = vpack.c.bf16 %v636_v39, %v635_v38 }
 0x102   :  { %v390_v41 = vpop.f32.mrf.mxu0  ;;  %v539_v42 = vpop.f32.mrf.mxu1 }
 0x103   :  { %768 = vmatmul.bf16.gmra.mxu2 %v663_v40  ;;  %v540_v43 = vadd.f32 %v539_v42, %v390_v41 }
 0x105   :  { %v2656_v48 = vadd.f32 %v2603_v21, %v540_v43 }
 0x107   :  { %v637_v51 = vmax.f32 %v2656_v48, 0.0 }
 0x10a   :  { %v392_v45 = vpop.f32.mrf.mxu0  ;;  %v541_v47 = vpop.f32.mrf.mxu1 }
 0x10b   :  { %v542_v49 = vadd.f32 %v541_v47, %v392_v45 }
 0x10d   :  { %v2659_v50 = vadd.f32 %v2603_v21, %v542_v49  ;;  %v2701_v49 = vpop.f32.mrf.mxu3 }
 0x10f   :  { %v638_v52 = vmax.f32 %v2659_v50, 0.0 }
 0x111   :  { %v664_v53 = vpack.c.bf16 %v638_v52, %v637_v51 }
 0x112   :  { %v395_v54 = vpop.f32.mrf.mxu0  ;;  %v544_v55 = vpop.f32.mrf.mxu1 }
 0x113   :  { %773 = vmatmul.bf16.gmra.mxu2 %v664_v53  ;;  %v545_v56 = vadd.f32 %v544_v55, %v395_v54 }
 0x115   :  { %v2664_v59 = vadd.f32 %v2603_v21, %v545_v56 }
 0x117   :  { %v639_v0 = vmax.f32 %v2664_v59, 0.0 }
 0x11a   :  { %v397_v57 = vpop.f32.mrf.mxu0  ;;  %v546_v58 = vpop.f32.mrf.mxu1 }
 0x11b   :  { %v547_v60 = vadd.f32 %v546_v58, %v397_v57  ;;  %v2703_v57 = vpop.f32.mrf.mxu3 }
 0x11d   :  { %v2667_v62 = vadd.f32 %v2603_v21, %v547_v60 }
 0x11f   :  { %v640_v1 = vmax.f32 %v2667_v62, 0.0 }
 0x121   :  { %v665_v2 = vpack.c.bf16 %v640_v1, %v639_v0 }
 0x122   :  { %v400_v3 = vpop.f32.mrf.mxu0  ;;  %v549_v4 = vpop.f32.mrf.mxu1 }
 0x123   :  { %778 = vmatmul.bf16.gmra.mxu2 %v665_v2  ;;  %v550_v5 = vadd.f32 %v549_v4, %v400_v3 }
 0x125   :  { %v2672_v8 = vadd.f32 %v2603_v21, %v550_v5 }
 0x127   :  { %v641_v11 = vmax.f32 %v2672_v8, 0.0 }
 0x12a   :  { %v402_v6 = vpop.f32.mrf.mxu0  ;;  %v551_v7 = vpop.f32.mrf.mxu1 }
 0x12b   :  { %v552_v9 = vadd.f32 %v551_v7, %v402_v6  ;;  %v2051_v6 = vld [vmem:[#allocation10 + $0x38] sm:$0xff]  ;;  %v2713_v7 = vpop.f32.mrf.mxu3 }
 0x12c   :  { %942 = vmatpush.bf16.msrb.mxu3 %v2051_v6 }
 0x12d   :  { %v2675_v10 = vadd.f32 %v2603_v21, %v552_v9 }
 0x12f   :  { %v642_v12 = vmax.f32 %v2675_v10, 0.0 }
 0x131   :  { %v666_v13 = vpack.c.bf16 %v642_v12, %v641_v11  ;;  %v2059_v11 = vld [vmem:[#allocation12 + $0x38] sm:$0xff]  ;;  %v2050_v12 = vld [vmem:[#allocation10 + $0x30] sm:$0xff] }
 0x132   :  { %v405_v15 = vpop.f32.mrf.mxu0  ;;  %v554_v18 = vpop.f32.mrf.mxu1  ;;  %1176 = vmatpush.bf16.msrb.mxu0 %v2059_v11  ;;  %943 = vmatpush.bf16.msrb.mxu3 %v2050_v12 }
 0x133   :  { %783 = vmatmul.bf16.gmra.mxu2 %v666_v13  ;;  %v555_v20 = vadd.f32 %v554_v18, %v405_v15 }
 0x135   :  { %v2682_v25 = vadd.f32 %v2603_v21, %v555_v20 }
 0x137   :  { %v643_v30 = vmax.f32 %v2682_v25, 0.0 }
 0x13a   :  { %v407_v22 = vpop.f32.mrf.mxu0  ;;  %v556_v23 = vpop.f32.mrf.mxu1 }
 0x13b   :  { %v557_v27 = vadd.f32 %v556_v23, %v407_v22  ;;  %v579_v23 = vpop.f32.mrf.mxu3 }
 0x13d   :  { %v2687_v29 = vadd.f32 %v2603_v21, %v557_v27 }
 0x13f   :  { %v644_v31 = vmax.f32 %v2687_v29, 0.0 }
 0x141   :  { %v667_v32 = vpack.c.bf16 %v644_v31, %v643_v30 }
 0x142   :  { %v410_v33 = vpop.f32.mrf.mxu0  ;;  %v559_v34 = vpop.f32.mrf.mxu1 }
 0x143   :  { %788 = vmatmul.bf16.gmra.mxu2 %v667_v32  ;;  %v560_v38 = vadd.f32 %v559_v34, %v410_v33  ;;  %v2049_v34 = vld [vmem:[#allocation10 + $0x28] sm:$0xff] }
 0x144   :  { %944 = vmatpush.bf16.msrb.mxu3 %v2049_v34  ;;  %v2057_v34 = vld [vmem:[#allocation12 + $0x28] sm:$0xff] }
 0x145   :  { %v2694_v41 = vadd.f32 %v2603_v21, %v560_v38 }
 0x147   :  { %v645_v45 = vmax.f32 %v2694_v41, 0.0 }
 0x14a   :  { %v412_v39 = vpop.f32.mrf.mxu0  ;;  %v561_v40 = vpop.f32.mrf.mxu1 }
 0x14b   :  { %v562_v42 = vadd.f32 %v561_v40, %v412_v39  ;;  %v581_v39 = vpop.f32.mrf.mxu3  ;;  %v2048_v40 = vld [vmem:[#allocation10 + $0x20] sm:$0xff] }
 0x14c   :  { %945 = vmatpush.bf16.msrb.mxu3 %v2048_v40 }
 0x14d   :  { %v2697_v43 = vadd.f32 %v2603_v21, %v562_v42 }
 0x14f   :  { %v646_v47 = vmax.f32 %v2697_v43, 0.0 }
 0x151   :  { %v668_v51 = vpack.c.bf16 %v646_v47, %v645_v45 }
 0x152   :  { %v415_v52 = vpop.f32.mrf.mxu0  ;;  %v564_v53 = vpop.f32.mrf.mxu1 }
 0x153   :  { %793 = vmatmul.bf16.gmra.mxu2 %v668_v51  ;;  %v565_v54 = vadd.f32 %v564_v53, %v415_v52 }
 0x155   :  { %v2706_v58 = vadd.f32 %v2603_v21, %v565_v54 }
 0x157   :  { %v647_v1 = vmax.f32 %v2706_v58, 0.0 }
 0x15a   :  { %v417_v55 = vpop.f32.mrf.mxu0  ;;  %v566_v56 = vpop.f32.mrf.mxu1 }
 0x15b   :  { %v567_v60 = vadd.f32 %v566_v56, %v417_v55  ;;  %v749_v55 = vpop.f32.mrf.mxu2 }
 0x15d   :  { %v2709_v0 = vadd.f32 %v2603_v21, %v567_v60  ;;  %v2058_v60 = vld [vmem:[#allocation12 + $0x30] sm:$0xff] }
 0x15e   :  { %1177 = vmatpush.bf16.msrb.mxu0 %v2058_v60 }
 0x15f   :  { %v648_v2 = vmax.f32 %v2709_v0, 0.0 }
 0x161   :  { %v669_v3 = vpack.c.bf16 %v648_v2, %v647_v1  ;;  %v2047_v1 = vld [vmem:[#allocation10 + $0x18] sm:$0xff]  ;;  %v584_v2 = vpop.f32.mrf.mxu3 }
 0x162   :  { %v420_v4 = vpop.f32.mrf.mxu0  ;;  %v569_v5 = vpop.f32.mrf.mxu1  ;;  %946 = vmatpush.bf16.msrb.mxu3 %v2047_v1  ;;  %1178 = vmatpush.bf16.msrb.mxu0 %v2057_v34  ;;  %v2055_v34 = vld [vmem:[#allocation12 + $0x18] sm:$0xff] }
 0x163   :  { %798 = vmatmul.bf16.gmra.mxu2 %v669_v3  ;;  %v570_v9 = vadd.f32 %v569_v5, %v420_v4  ;;  %v580_v3 = vadd.f32 %v579_v23, %v2679_v19  ;;  %v582_v4 = vadd.f32 %v581_v39, %v2684_v28  ;;  %v751_v11 = vpop.f32.mrf.mxu2  ;;  %v2045_v19 = vld [vmem:[#allocation10 + $0x8] sm:$0xff]  ;;  %v585_v28 = vadd.f32 %v584_v2, %v2691_v36 }
 0x165   :  { %v2716_v18 = vadd.f32 %v2603_v21, %v570_v9  ;;  %v2734_v5 = vadd.f32 %v2603_v21, %v580_v3  ;;  %v2737_v6 = vadd.f32 %v2603_v21, %v582_v4  ;;  %v2046_v9 = vld [vmem:[#allocation10 + $0x10] sm:$0xff]  ;;  %v2056_v3 = vld [vmem:[#allocation12 + $0x20] sm:$0xff] }
 0x166   :  { %947 = vmatpush.bf16.msrb.mxu3 %v2046_v9  ;;  %1179 = vmatpush.bf16.msrb.mxu0 %v2056_v3 }
 0x167   :  { %v649_v27 = vmax.f32 %v2716_v18, 0.0  ;;  %v653_v12 = vmax.f32 %v2734_v5, 0.0 }
 0x16a   :  { %v422_v13 = vpop.f32.mrf.mxu0  ;;  %v571_v15 = vpop.f32.mrf.mxu1  ;;  %948 = vmatpush.bf16.msrb.mxu3 %v2045_v19  ;;  %1180 = vmatpush.bf16.msrb.mxu0 %v2055_v34 }
 0x16b   :  { %v572_v20 = vadd.f32 %v571_v15, %v422_v13  ;;  %v654_v13 = vmax.f32 %v2737_v6, 0.0  ;;  %v586_v15 = vpop.f32.mrf.mxu3  ;;  %v754_v23 = vpop.f32.mrf.mxu2 }
 0x16d   :  { %v2719_v22 = vadd.f32 %v2603_v21, %v572_v20  ;;  %v672_v20 = vpack.c.bf16 %v654_v13, %v653_v12 }
 0x16f   :  { %v650_v30 = vmax.f32 %v2719_v22, 0.0 }
 0x171   :  { %v670_v31 = vpack.c.bf16 %v650_v30, %v649_v27  ;;  %v587_v27 = vadd.f32 %v586_v15, %v2701_v49 }
 0x172   :  { %v425_v32 = vpop.f32.mrf.mxu0  ;;  %v574_v33 = vpop.f32.mrf.mxu1 }
 0x173   :  { %803 = vmatmul.bf16.gmra.mxu2 %v670_v31  ;;  %v575_v38 = vadd.f32 %v574_v33, %v425_v32  ;;  %v589_v30 = vpop.f32.mrf.mxu3  ;;  %v2744_v31 = vadd.f32 %v2603_v21, %v585_v28  ;;  %v2747_v32 = vadd.f32 %v2603_v21, %v587_v27  ;;  %v2044_v33 = vld [vmem:[#allocation10] sm:$0xff]  ;;  %v756_v40 = vpop.f32.mrf.mxu2 }
 0x174   :  { %949 = vmatpush.bf16.msrb.mxu3 %v2044_v33  ;;  %v590_v49 = vadd.f32 %v589_v30, %v2703_v57  ;;  %v2762_v57 = vperm.slane %v2598_v16, 1 }
 0x175   :  { %v2724_v47 = vadd.f32 %v2603_v21, %v575_v38  ;;  %v655_v38 = vmax.f32 %v2744_v31, 0.0  ;;  %v656_v39 = vmax.f32 %v2747_v32, 0.0 }
 0x176   :  { %v750_v4 = vadd.f32 %v749_v55, %v2762_v57  ;;  %v755_v19 = vadd.f32 %v754_v23, %v2762_v57  ;;  %v2054_v23 = vld [vmem:[#allocation12 + $0x10] sm:$0xff] }
 0x177   :  { %v651_v53 = vmax.f32 %v2724_v47, 0.0  ;;  %v673_v36 = vpack.c.bf16 %v656_v39, %v655_v38  ;;  %1181 = vmatpush.bf16.msrb.mxu0 %v2054_v23 }
 0x178   :  { %v831_v27 = vmax.f32 %v755_v19, 0.0 }
 0x17a   :  { %v427_v42 = vpop.f32.mrf.mxu0  ;;  %v576_v45 = vpop.f32.mrf.mxu1 }
 0x17b   :  { %v577_v51 = vadd.f32 %v576_v45, %v427_v42  ;;  %v591_v42 = vpop.f32.mrf.mxu3 }
 0x17c   :  { %v592_v45 = vadd.f32 %v591_v42, %v2713_v7  ;;  %v752_v7 = vadd.f32 %v751_v11, %v2762_v57 }
 0x17d   :  { %v2727_v52 = vadd.f32 %v2603_v21, %v577_v51  ;;  %v759_v51 = vpop.f32.mrf.mxu2 }
 0x17e   :  { %v830_v12 = vmax.f32 %v752_v7, 0.0  ;;  %v760_v38 = vadd.f32 %v759_v51, %v2762_v57 }
 0x17f   :  { %v652_v54 = vmax.f32 %v2727_v52, 0.0 }
 0x181   :  { %v671_v56 = vpack.c.bf16 %v652_v54, %v651_v53  ;;  %v2754_v53 = vadd.f32 %v2603_v21, %v590_v49  ;;  %v2757_v54 = vadd.f32 %v2603_v21, %v592_v45  ;;  %v829_v21 = vmax.f32 %v750_v4, 0.0 }
 0x183   :  { %808 = vmatmul.bf16.vlgmr.msra.gmra.mxu3 %v671_v56  ;;  %v657_v56 = vmax.f32 %v2754_v53, 0.0  ;;  %v658_v60 = vmax.f32 %v2757_v54, 0.0  ;;  %v861_v13 = vpack.c.bf16 %v830_v12, %v829_v21 }
 0x185   :  { %v674_v1 = vpack.c.bf16 %v658_v60, %v657_v56  ;;  %v761_v2 = vpop.f32.mrf.mxu2 }
 0x186   :  { %v762_v11 = vadd.f32 %v761_v2, %v2762_v57  ;;  %v2067_v2 = vld [vmem:[#allocation13 + $0x38] sm:$0xff] }
 0x187   :  { %1378 = vmatpush.bf16.msrb.mxu1 %v2067_v2 }
 0x188   :  { %v834_v39 = vmax.f32 %v762_v11, 0.0 }
 0x18d   :  { %v764_v9 = vpop.f32.mrf.mxu2 }
 0x18e   :  { %v765_v45 = vadd.f32 %v764_v9, %v2762_v57 }
 0x193   :  { %813 = vmatmul.bf16.gmra.mxu3 %v672_v20  ;;  %v757_v20 = vadd.f32 %v756_v40, %v2762_v57 }
 0x195   :  { %v766_v15 = vpop.f32.mrf.mxu2  ;;  %v832_v28 = vmax.f32 %v757_v20, 0.0  ;;  %v2053_v20 = vld [vmem:[#allocation12 + $0x8] sm:$0xff] }
 0x196   :  { %v767_v40 = vadd.f32 %v766_v15, %v2762_v57  ;;  %1182 = vmatpush.bf16.msrb.mxu0 %v2053_v20 }
 0x197   :  { %v862_v33 = vpack.c.bf16 %v832_v28, %v831_v27  ;;  %v2066_v28 = vld [vmem:[#allocation13 + $0x30] sm:$0xff] }
 0x198   :  { %v836_v56 = vmax.f32 %v767_v40, 0.0  ;;  %1379 = vmatpush.bf16.msrb.mxu1 %v2066_v28 }
 0x19d   :  { %v769_v30 = vpop.f32.mrf.mxu2 }
 0x19e   :  { %v770_v4 = vadd.f32 %v769_v30, %v2762_v57 }
 0x1a0   :  { %v837_v21 = vmax.f32 %v770_v4, 0.0 }
 0x1a3   :  { %818 = vmatmul.bf16.gmra.mxu3 %v673_v36  ;;  %v833_v36 = vmax.f32 %v760_v38, 0.0 }
 0x1a5   :  { %v771_v55 = vpop.f32.mrf.mxu2  ;;  %v863_v42 = vpack.c.bf16 %v834_v39, %v833_v36 }
 0x1a6   :  { %v772_v51 = vadd.f32 %v771_v55, %v2762_v57 }
 0x1a8   :  { %v838_v12 = vmax.f32 %v772_v51, 0.0 }
 0x1ad   :  { %v774_v49 = vpop.f32.mrf.mxu2 }
 0x1ae   :  { %v775_v27 = vadd.f32 %v774_v49, %v2762_v57  ;;  %v2052_v49 = vld [vmem:[#allocation12] sm:$0xff] }
 0x1af   :  { %1183 = vmatpush.bf16.msrb.mxu0 %v2052_v49 }
 0x1b0   :  { %v839_v30 = vmax.f32 %v775_v27, 0.0  ;;  %v2065_v27 = vld [vmem:[#allocation13 + $0x28] sm:$0xff] }
 0x1b1   :  { %1380 = vmatpush.bf16.msrb.mxu1 %v2065_v27 }
 0x1b3   :  { %823 = vmatmul.bf16.gmra.mxu3 %v674_v1  ;;  %v835_v1 = vmax.f32 %v765_v45, 0.0 }
 0x1b5   :  { %v776_v60 = vpop.f32.mrf.mxu2  ;;  %v864_v3 = vpack.c.bf16 %v836_v56, %v835_v1 }
 0x1b6   :  { %v777_v19 = vadd.f32 %v776_v60, %v2762_v57 }
 0x1b8   :  { %v840_v34 = vmax.f32 %v777_v19, 0.0 }
 0x1bd   :  { %v779_v7 = vpop.f32.mrf.mxu2 }
 0x1be   :  { %v780_v60 = vadd.f32 %v779_v7, %v2762_v57 }
 0x1c0   :  { %v841_v51 = vmax.f32 %v780_v60, 0.0 }
 0x1c3   :  { %950 = vmatmul.bf16.vlgmr.msrb.gmra.mxu3 %v861_v13  ;;  %v865_v13 = vpack.c.bf16 %v838_v12, %v837_v21 }
 0x1c5   :  { %v781_v15 = vpop.f32.mrf.mxu2 }
 0x1c6   :  { %v782_v56 = vadd.f32 %v781_v15, %v2762_v57 }
 0x1c8   :  { %v842_v1 = vmax.f32 %v782_v56, 0.0 }
 0x1ca   :  { %v867_v20 = vpack.c.bf16 %v842_v1, %v841_v51 }
 0x1d3   :  { %955 = vmatmul.bf16.gmra.mxu3 %v862_v33  ;;  %v784_v33 = vpop.f32.mrf.mxu2 }
 0x1d4   :  { %v785_v7 = vadd.f32 %v784_v33, %v2762_v57 }
 0x1db   :  { %v786_v23 = vpop.f32.mrf.mxu2 }
 0x1dc   :  { %v787_v15 = vadd.f32 %v786_v23, %v2762_v57 }
 0x1e3   :  { %960 = vmatmul.bf16.gmra.mxu3 %v863_v42  ;;  %v866_v42 = vpack.c.bf16 %v840_v34, %v839_v30  ;;  %v789_v12 = vpop.f32.mrf.mxu2  ;;  %v844_v34 = vmax.f32 %v787_v15, 0.0  ;;  %v843_v30 = vmax.f32 %v785_v7, 0.0 }
 0x1e4   :  { %v790_v33 = vadd.f32 %v789_v12, %v2762_v57 }
 0x1e6   :  { %v845_v51 = vmax.f32 %v790_v33, 0.0 }
 0x1eb   :  { %v791_v28 = vpop.f32.mrf.mxu2 }
 0x1ec   :  { %v792_v49 = vadd.f32 %v791_v28, %v2762_v57  ;;  %v2799_v28 = vperm.slane %v2598_v16, 2 }
 0x1ee   :  { %v846_v60 = vmax.f32 %v792_v49, 0.0 }
 0x1f3   :  { %965 = vmatmul.bf16.gmra.mxu3 %v864_v3  ;;  %v794_v56 = vpop.f32.mrf.mxu2 }
 0x203   :  { %970 = vmatmul.bf16.gmra.mxu3 %v865_v13 }
 0x206   :  { %v809_v9 = vpop.f32.mrf.mxu3 }
 0x207   :  { %v810_v11 = vadd.f32 %v809_v9, %v2762_v57 }
 0x209   :  { %v853_v39 = vmax.f32 %v810_v11, 0.0 }
 0x20e   :  { %v811_v55 = vpop.f32.mrf.mxu3 }
 0x20f   :  { %v812_v38 = vadd.f32 %v811_v55, %v2762_v57 }
 0x211   :  { %v854_v36 = vmax.f32 %v812_v38, 0.0 }
 0x213   :  { %975 = vmatmul.bf16.gmra.mxu3 %v866_v42  ;;  %v2778_v40 = vpack.c.bf16 %v854_v36, %v853_v39  ;;  %v868_v42 = vpack.c.bf16 %v844_v34, %v843_v30  ;;  %v795_v34 = vadd.f32 %v794_v56, %v2762_v57 }
 0x216   :  { %v814_v45 = vpop.f32.mrf.mxu3 }
 0x217   :  { %v815_v3 = vadd.f32 %v814_v45, %v2762_v57 }
 0x219   :  { %v855_v21 = vmax.f32 %v815_v3, 0.0  ;;  %v796_v3 = vpop.f32.mrf.mxu2 }
 0x21a   :  { %v797_v27 = vadd.f32 %v796_v3, %v2762_v57 }
 0x21e   :  { %v816_v2 = vpop.f32.mrf.mxu3 }
 0x21f   :  { %v817_v4 = vadd.f32 %v816_v2, %v2762_v57 }
 0x221   :  { %v856_v13 = vmax.f32 %v817_v4, 0.0  ;;  %v799_v12 = vpop.f32.mrf.mxu2 }
 0x223   :  { %980 = vmatmul.bf16.gmra.mxu3 %v867_v20  ;;  %v2784_v9 = vpack.c.bf16 %v856_v13, %v855_v21  ;;  %v869_v20 = vpack.c.bf16 %v846_v60, %v845_v51 }
 0x226   :  { %v819_v19 = vpop.f32.mrf.mxu3 }
 0x227   :  { %v820_v11 = vadd.f32 %v819_v19, %v2762_v57  ;;  %v2064_v19 = vld [vmem:[#allocation13 + $0x20] sm:$0xff] }
 0x228   :  { %1381 = vmatpush.bf16.msrb.mxu1 %v2064_v19 }
 0x229   :  { %v857_v39 = vmax.f32 %v820_v11, 0.0 }
 0x22e   :  { %v821_v55 = vpop.f32.mrf.mxu3 }
 0x22f   :  { %v822_v38 = vadd.f32 %v821_v55, %v2762_v57  ;;  %v848_v55 = vmax.f32 %v797_v27, 0.0 }
 0x231   :  { %v858_v36 = vmax.f32 %v822_v38, 0.0  ;;  %v847_v38 = vmax.f32 %v795_v34, 0.0 }
 0x233   :  { %985 = vmatmul.bf16.gmra.mxu3 %v868_v42  ;;  %v2790_v45 = vpack.c.bf16 %v858_v36, %v857_v39  ;;  %v870_v16 = vpack.c.bf16 %v848_v55, %v847_v38 }
 0x236   :  { %v824_v23 = vpop.f32.mrf.mxu3 }
 0x237   :  { %v825_v1 = vadd.f32 %v824_v23, %v2762_v57  ;;  %v801_v23 = vpop.f32.mrf.mxu2 }
 0x239   :  { %v859_v21 = vmax.f32 %v825_v1, 0.0  ;;  %v802_v1 = vadd.f32 %v801_v23, %v2762_v57 }
 0x23e   :  { %v826_v2 = vpop.f32.mrf.mxu3 }
 0x23f   :  { %v827_v4 = vadd.f32 %v826_v2, %v2762_v57  ;;  %v2063_v2 = vld [vmem:[#allocation13 + $0x18] sm:$0xff]  ;;  %v804_v51 = vpop.f32.mrf.mxu2 }
 0x240   :  { %1382 = vmatpush.bf16.msrb.mxu1 %v2063_v2 }
 0x241   :  { %v860_v13 = vmax.f32 %v827_v4, 0.0 }
 0x243   :  { %990 = vmatmul.bf16.gmra.mxu3 %v869_v20  ;;  %v2796_v15 = vpack.c.bf16 %v860_v13, %v859_v21 }
 0x246   :  { %v951_v7 = vpop.f32.mrf.mxu3 }
 0x247   :  { %v952_v11 = vadd.f32 %v951_v7, %v2799_v28 }
 0x249   :  { %v2805_v39 = vadd.f32 %v952_v11, %v2607_v24  ;;  %v800_v24 = vadd.f32 %v799_v12, %v2762_v57  ;;  %v806_v11 = vpop.f32.mrf.mxu2 }
 0x24b   :  { %v1063_v49 = vmax.f32 %v2805_v39, 0.0  ;;  %v849_v21 = vmax.f32 %v800_v24, 0.0 }
 0x24e   :  { %v953_v30 = vpop.f32.mrf.mxu3 }
 0x24f   :  { %v954_v36 = vadd.f32 %v953_v30, %v2799_v28  ;;  %v807_v30 = vadd.f32 %v806_v11, %v2762_v57 }
 0x251   :  { %v2809_v42 = vadd.f32 %v954_v36, %v2610_v26  ;;  %v850_v26 = vmax.f32 %v802_v1, 0.0  ;;  %v852_v36 = vmax.f32 %v807_v30, 0.0 }
 0x253   :  { %v1064_v33 = vmax.f32 %v2809_v42, 0.0  ;;  %995 = vmatmul.bf16.gmra.mxu3 %v870_v16  ;;  %v871_v7 = vpack.c.bf16 %v850_v26, %v849_v21 }
 0x255   :  { %v1095_v56 = vpack.c.bf16 %v1064_v33, %v1063_v49 }
 0x256   :  { %v956_v60 = vpop.f32.mrf.mxu3 }
 0x257   :  { %1184 = vmatmul.bf16.vlgmr.msrb.gmra.mxu0 %v1095_v56  ;;  %v957_v3 = vadd.f32 %v956_v60, %v2799_v28 }
 0x259   :  { %v2817_v13 = vadd.f32 %v957_v3, %v2618_v44  ;;  %v805_v44 = vadd.f32 %v804_v51, %v2762_v57  ;;  %v2062_v57 = vld [vmem:[#allocation13 + $0x10] sm:$0xff] }
 0x25a   :  { %1383 = vmatpush.bf16.msrb.mxu1 %v2062_v57 }
 0x25b   :  { %v1065_v27 = vmax.f32 %v2817_v13, 0.0 }
 0x25e   :  { %v958_v4 = vpop.f32.mrf.mxu3 }
 0x25f   :  { %v959_v20 = vadd.f32 %v958_v4, %v2799_v28 }
 0x261   :  { %v2821_v19 = vadd.f32 %v959_v20, %v2621_v46  ;;  %v851_v46 = vmax.f32 %v805_v44, 0.0 }
 0x263   :  { %v1066_v12 = vmax.f32 %v2821_v19, 0.0  ;;  %1000 = vmatmul.bf16.gmra.mxu3 %v871_v7  ;;  %v872_v56 = vpack.c.bf16 %v852_v36, %v851_v46 }
 0x265   :  { %v1096_v34 = vpack.c.bf16 %v1066_v12, %v1065_v27 }
 0x266   :  { %v961_v55 = vpop.f32.mrf.mxu3 }
 0x267   :  { %1189 = vmatmul.bf16.gmra.mxu0 %v1096_v34  ;;  %v962_v38 = vadd.f32 %v961_v55, %v2799_v28 }
 0x269   :  { %v2829_v23 = vadd.f32 %v962_v38, %v2628_v61 }
 0x26b   :  { %v1067_v60 = vmax.f32 %v2829_v23, 0.0 }
 0x26e   :  { %v963_v16 = vpop.f32.mrf.mxu3 }
 0x26f   :  { %v964_v49 = vadd.f32 %v963_v16, %v2799_v28 }
 0x271   :  { %v2833_v33 = vadd.f32 %v964_v49, %v2631_v63  ;;  %v2075_v49 = vld [vmem:[#allocation15 + $0x38] sm:$0xff] }
 0x272   :  { %1612 = vmatpush.bf16.msrb.mxu2 %v2075_v49  ;;  %2183 = vmatpush.bf16.msra.mxu3 %v2075_v49 }
 0x273   :  { %v1068_v1 = vmax.f32 %v2833_v33, 0.0  ;;  %1005 = vmatmul.bf16.gmra.mxu3 %v872_v56 }
 0x275   :  { %v1097_v24 = vpack.c.bf16 %v1068_v1, %v1067_v60  ;;  %v2060_v1 = vld [vmem:[#allocation13] sm:$0xff] }
 0x276   :  { %v966_v3 = vpop.f32.mrf.mxu3 }
 0x277   :  { %1194 = vmatmul.bf16.gmra.mxu0 %v1097_v24  ;;  %v967_v2 = vadd.f32 %v966_v3, %v2799_v28 }
 0x279   :  { %v2839_v51 = vadd.f32 %v967_v2, %v2638_v14 }
 0x27b   :  { %v1069_v4 = vmax.f32 %v2839_v51, 0.0 }
 0x27e   :  { %v968_v61 = vpop.f32.mrf.mxu3 }
 0x27f   :  { %v969_v63 = vadd.f32 %v968_v61, %v2799_v28 }
 0x281   :  { %v2843_v26 = vadd.f32 %v969_v63, %v2641_v17 }
 0x283   :  { %v1070_v21 = vmax.f32 %v2843_v26, 0.0  ;;  %1010 = vmatmul.bf16.gmra.mxu3 %v2778_v40  ;;  %v2061_v40 = vld [vmem:[#allocation13 + $0x8] sm:$0xff] }
 0x284   :  { %1384 = vmatpush.bf16.msrb.mxu1 %v2061_v40 }
 0x285   :  { %v1098_v20 = vpack.c.bf16 %v1070_v21, %v1069_v4  ;;  %v2074_v21 = vld [vmem:[#allocation15 + $0x30] sm:$0xff] }
 0x286   :  { %v971_v7 = vpop.f32.mrf.mxu3  ;;  %1613 = vmatpush.bf16.msrb.mxu2 %v2074_v21  ;;  %2184 = vmatpush.bf16.msra.mxu3 %v2074_v21 }
 0x287   :  { %1199 = vmatmul.bf16.gmra.mxu0 %v1098_v20  ;;  %v972_v27 = vadd.f32 %v971_v7, %v2799_v28 }
 0x288   :  { %1385 = vmatpush.bf16.msrb.mxu1 %v2060_v1 }
 0x289   :  { %v2850_v14 = vadd.f32 %v972_v27, %v2648_v35 }
 0x28b   :  { %v1071_v11 = vmax.f32 %v2850_v14, 0.0 }
 0x28e   :  { %v973_v12 = vpop.f32.mrf.mxu3 }
 0x28f   :  { %v974_v34 = vadd.f32 %v973_v12, %v2799_v28 }
 0x291   :  { %v2854_v17 = vadd.f32 %v974_v34, %v2651_v37 }
 0x293   :  { %v1072_v55 = vmax.f32 %v2854_v17, 0.0  ;;  %1015 = vmatmul.bf16.gmra.mxu3 %v2784_v9 }
 0x295   :  { %v1099_v30 = vpack.c.bf16 %v1072_v55, %v1071_v11 }
 0x296   :  { %v976_v44 = vpop.f32.mrf.mxu3 }
 0x297   :  { %1204 = vmatmul.bf16.gmra.mxu0 %v1099_v30  ;;  %v977_v38 = vadd.f32 %v976_v44, %v2799_v28 }
 0x299   :  { %v2861_v36 = vadd.f32 %v977_v38, %v2656_v48  ;;  %v2073_v38 = vld [vmem:[#allocation15 + $0x28] sm:$0xff] }
 0x29a   :  { %1614 = vmatpush.bf16.msrb.mxu2 %v2073_v38  ;;  %2185 = vmatpush.bf16.msra.mxu3 %v2073_v38 }
 0x29b   :  { %v1073_v46 = vmax.f32 %v2861_v36, 0.0 }
 0x29e   :  { %v978_v35 = vpop.f32.mrf.mxu3 }
 0x29f   :  { %v979_v37 = vadd.f32 %v978_v35, %v2799_v28 }
 0x2a1   :  { %v2865_v16 = vadd.f32 %v979_v37, %v2659_v50 }
 0x2a3   :  { %v1074_v9 = vmax.f32 %v2865_v16, 0.0  ;;  %1020 = vmatmul.bf16.gmra.mxu3 %v2790_v45 }
 0x2a5   :  { %v1100_v56 = vpack.c.bf16 %v1074_v9, %v1073_v46  ;;  %v2901_v9 = vld [vmem:[#allocation16] sm:$0xff] }
 0x2a6   :  { %v981_v60 = vpop.f32.mrf.mxu3 }
 0x2a7   :  { %1209 = vmatmul.bf16.gmra.mxu0 %v1100_v56  ;;  %v982_v48 = vadd.f32 %v981_v60, %v2799_v28 }
 0x2a9   :  { %v2872_v50 = vadd.f32 %v982_v48, %v2664_v59 }
 0x2ab   :  { %v1075_v45 = vmax.f32 %v2872_v50, 0.0 }
 0x2ae   :  { %v983_v57 = vpop.f32.mrf.mxu3 }
 0x2af   :  { %v984_v24 = vadd.f32 %v983_v57, %v2799_v28 }
 0x2b1   :  { %v2876_v3 = vadd.f32 %v984_v24, %v2667_v62 }
 0x2b3   :  { %v1076_v2 = vmax.f32 %v2876_v3, 0.0  ;;  %1025 = vmatmul.bf16.gmra.mxu3 %v2796_v15 }
 0x2b5   :  { %v1101_v61 = vpack.c.bf16 %v1076_v2, %v1075_v45 }
 0x2b6   :  { %v986_v63 = vpop.f32.mrf.mxu3 }
 0x2b7   :  { %1214 = vmatmul.bf16.gmra.mxu0 %v1101_v61  ;;  %v987_v4 = vadd.f32 %v986_v63, %v2799_v28 }
 0x2b9   :  { %v2883_v20 = vadd.f32 %v987_v4, %v2672_v8 }
 0x2bb   :  { %v1077_v27 = vmax.f32 %v2883_v20, 0.0 }
 0x2be   :  { %v988_v59 = vpop.f32.mrf.mxu3 }
 0x2bf   :  { %v989_v62 = vadd.f32 %v988_v59, %v2799_v28 }
 0x2c1   :  { %v2887_v7 = vadd.f32 %v989_v62, %v2675_v10 }
 0x2c3   :  { %v1078_v15 = vmax.f32 %v2887_v7, 0.0 }
 0x2c5   :  { %v1102_v12 = vpack.c.bf16 %v1078_v15, %v1077_v27  ;;  %v2072_v15 = vld [vmem:[#allocation15 + $0x20] sm:$0xff] }
 0x2c6   :  { %v991_v34 = vpop.f32.mrf.mxu3  ;;  %1615 = vmatpush.bf16.msrb.mxu2 %v2072_v15  ;;  %2186 = vmatpush.bf16.msra.mxu3 %v2072_v15 }
 0x2c7   :  { %1219 = vmatmul.bf16.gmra.mxu0 %v1102_v12  ;;  %v992_v11 = vadd.f32 %v991_v34, %v2799_v28 }
 0x2c9   :  { %v2893_v40 = vadd.f32 %v992_v11, %v2682_v25  ;;  %v2904_v25 = vperm.slane %v2901_v9, 3 }
 0x2cb   :  { %v1079_v10 = vmax.f32 %v2893_v40, 0.0 }
 0x2ce   :  { %v993_v55 = vpop.f32.mrf.mxu3 }
 0x2cf   :  { %v994_v8 = vadd.f32 %v993_v55, %v2799_v28 }
 0x2d1   :  { %v2897_v30 = vadd.f32 %v994_v8, %v2687_v29 }
 0x2d3   :  { %v1080_v44 = vmax.f32 %v2897_v30, 0.0 }
 0x2d4   :  { %v1185_v35 = vpop.f32.mrf.mxu0 }
 0x2d5   :  { %v1103_v37 = vpack.c.bf16 %v1080_v44, %v1079_v10  ;;  %v1186_v49 = vadd.f32 %v1185_v35, %v2904_v25 }
 0x2d6   :  { %v996_v46 = vpop.f32.mrf.mxu3 }
 0x2d7   :  { %1224 = vmatmul.bf16.gmra.mxu0 %v1103_v37  ;;  %v997_v29 = vadd.f32 %v996_v46, %v2799_v28  ;;  %v1265_v1 = vmax.f32 %v1186_v49, 0.0 }
 0x2d9   :  { %v2910_v57 = vadd.f32 %v997_v29, %v2694_v41 }
 0x2db   :  { %v1081_v63 = vmax.f32 %v2910_v57, 0.0 }
 0x2dc   :  { %v1187_v56 = vpop.f32.mrf.mxu0 }
 0x2dd   :  { %v1188_v60 = vadd.f32 %v1187_v56, %v2904_v25 }
 0x2de   :  { %v998_v48 = vpop.f32.mrf.mxu3 }
 0x2df   :  { %v1266_v24 = vmax.f32 %v1188_v60, 0.0  ;;  %v999_v45 = vadd.f32 %v998_v48, %v2799_v28 }
 0x2e1   :  { %v1297_v2 = vpack.c.bf16 %v1266_v24, %v1265_v1  ;;  %v2914_v61 = vadd.f32 %v999_v45, %v2697_v43 }
 0x2e3   :  { %v1082_v4 = vmax.f32 %v2914_v61, 0.0  ;;  %1386 = vmatmul.bf16.vlgmr.msrb.gmra.mxu1 %v1297_v2 }
 0x2e4   :  { %v1190_v21 = vpop.f32.mrf.mxu0 }
 0x2e5   :  { %v1104_v59 = vpack.c.bf16 %v1082_v4, %v1081_v63  ;;  %v1191_v27 = vadd.f32 %v1190_v21, %v2904_v25 }
 0x2e6   :  { %v1001_v62 = vpop.f32.mrf.mxu3 }
 0x2e7   :  { %1229 = vmatmul.bf16.gmra.mxu0 %v1104_v59  ;;  %v1002_v41 = vadd.f32 %v1001_v62, %v2799_v28  ;;  %v1267_v11 = vmax.f32 %v1191_v27, 0.0  ;;  %v2071_v62 = vld [vmem:[#allocation15 + $0x18] sm:$0xff] }
 0x2e8   :  { %1616 = vmatpush.bf16.msrb.mxu2 %v2071_v62  ;;  %2187 = vmatpush.bf16.msra.mxu3 %v2071_v62 }
 0x2e9   :  { %v2922_v55 = vadd.f32 %v1002_v41, %v2706_v58 }
 0x2eb   :  { %v1083_v35 = vmax.f32 %v2922_v55, 0.0 }
 0x2ec   :  { %v1192_v12 = vpop.f32.mrf.mxu0 }
 0x2ed   :  { %v1193_v34 = vadd.f32 %v1192_v12, %v2904_v25 }
 0x2ee   :  { %v1003_v43 = vpop.f32.mrf.mxu3 }
 0x2ef   :  { %v1268_v8 = vmax.f32 %v1193_v34, 0.0  ;;  %v1004_v10 = vadd.f32 %v1003_v43, %v2799_v28 }
 0x2f1   :  { %v2926_v44 = vadd.f32 %v1004_v10, %v2709_v0  ;;  %v1298_v38 = vpack.c.bf16 %v1268_v8, %v1267_v11 }
 0x2f3   :  { %v1084_v37 = vmax.f32 %v2926_v44, 0.0  ;;  %1391 = vmatmul.bf16.gmra.mxu1 %v1298_v38 }
 0x2f4   :  { %v1195_v46 = vpop.f32.mrf.mxu0 }
 0x2f5   :  { %v1105_v49 = vpack.c.bf16 %v1084_v37, %v1083_v35  ;;  %v1196_v56 = vadd.f32 %v1195_v46, %v2904_v25 }
 0x2f6   :  { %v1006_v29 = vpop.f32.mrf.mxu3 }
 0x2f7   :  { %1234 = vmatmul.bf16.gmra.mxu0 %v1105_v49  ;;  %v1007_v58 = vadd.f32 %v1006_v29, %v2799_v28  ;;  %v1269_v0 = vmax.f32 %v1196_v56, 0.0 }
 0x2f9   :  { %v2934_v24 = vadd.f32 %v1007_v58, %v2716_v18 }
 0x2fb   :  { %v1085_v21 = vmax.f32 %v2934_v24, 0.0 }
 0x2fc   :  { %v1197_v60 = vpop.f32.mrf.mxu0 }
 0x2fd   :  { %v1198_v48 = vadd.f32 %v1197_v60, %v2904_v25 }
 0x2fe   :  { %v1008_v1 = vpop.f32.mrf.mxu3 }
 0x2ff   :  { %v1270_v45 = vmax.f32 %v1198_v48, 0.0  ;;  %v1009_v2 = vadd.f32 %v1008_v1, %v2799_v28  ;;  %v2070_v48 = vld [vmem:[#allocation15 + $0x10] sm:$0xff] }
 0x300   :  { %1617 = vmatpush.bf16.msrb.mxu2 %v2070_v48  ;;  %2188 = vmatpush.bf16.msra.mxu3 %v2070_v48 }
 0x301   :  { %v2938_v63 = vadd.f32 %v1009_v2, %v2719_v22  ;;  %v1299_v4 = vpack.c.bf16 %v1270_v45, %v1269_v0 }
 0x303   :  { %v1086_v59 = vmax.f32 %v2938_v63, 0.0  ;;  %1396 = vmatmul.bf16.gmra.mxu1 %v1299_v4 }
 0x304   :  { %v1200_v27 = vpop.f32.mrf.mxu0 }
 0x305   :  { %v1106_v41 = vpack.c.bf16 %v1086_v59, %v1085_v21  ;;  %v1201_v18 = vadd.f32 %v1200_v27, %v2904_v25 }
 0x306   :  { %v1011_v15 = vpop.f32.mrf.mxu3 }
 0x307   :  { %1239 = vmatmul.bf16.gmra.mxu0 %v1106_v41  ;;  %v1012_v12 = vadd.f32 %v1011_v15, %v2799_v28  ;;  %v1271_v11 = vmax.f32 %v1201_v18, 0.0 }
 0x309   :  { %v2946_v8 = vadd.f32 %v1012_v12, %v2724_v47 }
 0x30b   :  { %v1087_v46 = vmax.f32 %v2946_v8, 0.0 }
 0x30c   :  { %v1202_v34 = vpop.f32.mrf.mxu0 }
 0x30d   :  { %v1203_v22 = vadd.f32 %v1202_v34, %v2904_v25 }
 0x30e   :  { %v1013_v43 = vpop.f32.mrf.mxu3 }
 0x30f   :  { %v1272_v10 = vmax.f32 %v1203_v22, 0.0  ;;  %v1014_v38 = vadd.f32 %v1013_v43, %v2799_v28 }
 0x311   :  { %v2950_v35 = vadd.f32 %v1014_v38, %v2727_v52  ;;  %v1300_v37 = vpack.c.bf16 %v1272_v10, %v1271_v11 }
 0x313   :  { %v1088_v49 = vmax.f32 %v2950_v35, 0.0  ;;  %1401 = vmatmul.bf16.gmra.mxu1 %v1300_v37 }
 0x314   :  { %v1205_v29 = vpop.f32.mrf.mxu0 }
 0x315   :  { %v1107_v56 = vpack.c.bf16 %v1088_v49, %v1087_v46  ;;  %v1206_v60 = vadd.f32 %v1205_v29, %v2904_v25  ;;  %v2069_v29 = vld [vmem:[#allocation15 + $0x8] sm:$0xff] }
 0x316   :  { %v1016_v58 = vpop.f32.mrf.mxu3  ;;  %1618 = vmatpush.bf16.msrb.mxu2 %v2069_v29  ;;  %2189 = vmatpush.bf16.msra.mxu3 %v2069_v29 }
 0x317   :  { %1244 = vmatmul.bf16.gmra.mxu0 %v1107_v56  ;;  %v1017_v47 = vadd.f32 %v1016_v58, %v2799_v28  ;;  %v1273_v45 = vmax.f32 %v1206_v60, 0.0 }
 0x319   :  { %v2958_v2 = vadd.f32 %v1017_v47, %v2734_v5 }
 0x31b   :  { %v1089_v27 = vmax.f32 %v2958_v2, 0.0 }
 0x31c   :  { %v1207_v1 = vpop.f32.mrf.mxu0 }
 0x31d   :  { %v1208_v0 = vadd.f32 %v1207_v1, %v2904_v25 }
 0x31e   :  { %v1018_v52 = vpop.f32.mrf.mxu3 }
 0x31f   :  { %v1274_v4 = vmax.f32 %v1208_v0, 0.0  ;;  %v1019_v21 = vadd.f32 %v1018_v52, %v2799_v28 }
 0x321   :  { %v1301_v59 = vpack.c.bf16 %v1274_v4, %v1273_v45  ;;  %v2962_v62 = vadd.f32 %v1019_v21, %v2737_v6 }
 0x323   :  { %v1090_v41 = vmax.f32 %v2962_v62, 0.0  ;;  %1406 = vmatmul.bf16.gmra.mxu1 %v1301_v59 }
 0x324   :  { %v1210_v15 = vpop.f32.mrf.mxu0 }
 0x325   :  { %v1108_v18 = vpack.c.bf16 %v1090_v41, %v1089_v27  ;;  %v1211_v34 = vadd.f32 %v1210_v15, %v2904_v25 }
 0x326   :  { %v1021_v12 = vpop.f32.mrf.mxu3 }
 0x327   :  { %1249 = vmatmul.bf16.gmra.mxu0 %v1108_v18  ;;  %v1022_v5 = vadd.f32 %v1021_v12, %v2799_v28  ;;  %v1275_v10 = vmax.f32 %v1211_v34, 0.0 }
 0x329   :  { %v2970_v6 = vadd.f32 %v1022_v5, %v2744_v31 }
 0x32b   :  { %v1091_v56 = vmax.f32 %v2970_v6, 0.0 }
 0x32c   :  { %v1212_v22 = vpop.f32.mrf.mxu0 }
 0x32d   :  { %v1213_v43 = vadd.f32 %v1212_v22, %v2904_v25 }
 0x32e   :  { %v1023_v11 = vpop.f32.mrf.mxu3 }
 0x32f   :  { %v1276_v38 = vmax.f32 %v1213_v43, 0.0  ;;  %v1024_v37 = vadd.f32 %v1023_v11, %v2799_v28 }
 0x331   :  { %v1302_v46 = vpack.c.bf16 %v1276_v38, %v1275_v10  ;;  %v2974_v49 = vadd.f32 %v1024_v37, %v2747_v32 }
 0x333   :  { %v1092_v58 = vmax.f32 %v2974_v49, 0.0  ;;  %1411 = vmatmul.bf16.gmra.mxu1 %v1302_v46 }
 0x334   :  { %v1215_v60 = vpop.f32.mrf.mxu0 }
 0x335   :  { %v1109_v47 = vpack.c.bf16 %v1092_v58, %v1091_v56  ;;  %v1216_v31 = vadd.f32 %v1215_v60, %v2904_v25 }
 0x336   :  { %v1026_v48 = vpop.f32.mrf.mxu3 }
 0x337   :  { %1254 = vmatmul.bf16.gmra.mxu0 %v1109_v47  ;;  %v1027_v1 = vadd.f32 %v1026_v48, %v2799_v28  ;;  %v1277_v45 = vmax.f32 %v1216_v31, 0.0  ;;  %v2995_v47 = vperm.slane %v2901_v9, 4 }
 0x339   :  { %v2982_v4 = vadd.f32 %v1027_v1, %v2754_v53  ;;  %v2068_v53 = vld [vmem:[#allocation15] sm:$0xff] }
 0x33a   :  { %1619 = vmatpush.bf16.msrb.mxu2 %v2068_v53  ;;  %2190 = vmatpush.bf16.msra.mxu3 %v2068_v53 }
 0x33b   :  { %v1093_v15 = vmax.f32 %v2982_v4, 0.0 }
 0x33c   :  { %v1217_v0 = vpop.f32.mrf.mxu0 }
 0x33d   :  { %v1218_v32 = vadd.f32 %v1217_v0, %v2904_v25 }
 0x33e   :  { %v1028_v52 = vpop.f32.mrf.mxu3 }
 0x33f   :  { %v1278_v21 = vmax.f32 %v1218_v32, 0.0  ;;  %v1029_v59 = vadd.f32 %v1028_v52, %v2799_v28 }
 0x341   :  { %v1303_v27 = vpack.c.bf16 %v1278_v21, %v1277_v45  ;;  %v2986_v41 = vadd.f32 %v1029_v59, %v2757_v54 }
 0x343   :  { %v1094_v18 = vmax.f32 %v2986_v41, 0.0  ;;  %1416 = vmatmul.bf16.gmra.mxu1 %v1303_v27 }
 0x344   :  { %v1220_v12 = vpop.f32.mrf.mxu0 }
 0x345   :  { %v1110_v34 = vpack.c.bf16 %v1094_v18, %v1093_v15  ;;  %v1221_v5 = vadd.f32 %v1220_v12, %v2904_v25 }
 0x347   :  { %1259 = vmatmul.bf16.gmra.mxu0 %v1110_v34  ;;  %v1279_v28 = vmax.f32 %v1221_v5, 0.0 }
 0x34c   :  { %v1222_v22 = vpop.f32.mrf.mxu0 }
 0x34d   :  { %v1223_v43 = vadd.f32 %v1222_v22, %v2904_v25 }
 0x34f   :  { %v1280_v11 = vmax.f32 %v1223_v43, 0.0 }
 0x351   :  { %v1304_v54 = vpack.c.bf16 %v1280_v11, %v1279_v28 }
 0x353   :  { %1421 = vmatmul.bf16.gmra.mxu1 %v1304_v54 }
 0x354   :  { %v1225_v10 = vpop.f32.mrf.mxu0 }
 0x355   :  { %v1226_v38 = vadd.f32 %v1225_v10, %v2904_v25 }
 0x357   :  { %v1281_v29 = vmax.f32 %v1226_v38, 0.0 }
 0x35c   :  { %v1227_v37 = vpop.f32.mrf.mxu0 }
 0x35d   :  { %v1228_v46 = vadd.f32 %v1227_v37, %v2904_v25 }
 0x35f   :  { %v1282_v56 = vmax.f32 %v1228_v46, 0.0 }
 0x360   :  { %v1387_v58 = vpop.f32.mrf.mxu1 }
 0x361   :  { %v1305_v60 = vpack.c.bf16 %v1282_v56, %v1281_v29  ;;  %v1388_v31 = vadd.f32 %v1387_v58, %v2995_v47 }
 0x363   :  { %1426 = vmatmul.bf16.gmra.mxu1 %v1305_v60  ;;  %v1467_v0 = vadd.f32 %v1388_v31, %v2805_v39 }
 0x364   :  { %v1230_v48 = vpop.f32.mrf.mxu0 }
 0x365   :  { %v1231_v52 = vadd.f32 %v1230_v48, %v2904_v25  ;;  %v1499_v59 = vmax.f32 %v1467_v0, 0.0 }
 0x367   :  { %v1283_v18 = vmax.f32 %v1231_v52, 0.0 }
 0x368   :  { %v1389_v1 = vpop.f32.mrf.mxu1 }
 0x369   :  { %v1390_v32 = vadd.f32 %v1389_v1, %v2995_v47 }
 0x36b   :  { %v1468_v45 = vadd.f32 %v1390_v32, %v2809_v42 }
 0x36c   :  { %v1232_v21 = vpop.f32.mrf.mxu0 }
 0x36d   :  { %v1500_v27 = vmax.f32 %v1468_v45, 0.0  ;;  %v1233_v15 = vadd.f32 %v1232_v21, %v2904_v25 }
 0x36f   :  { %v1531_v12 = vpack.c.bf16 %v1500_v27, %v1499_v59  ;;  %v1284_v34 = vmax.f32 %v1233_v15, 0.0 }
 0x370   :  { %v1392_v5 = vpop.f32.mrf.mxu1 }
 0x371   :  { %v1306_v22 = vpack.c.bf16 %v1284_v34, %v1283_v18  ;;  %1620 = vmatmul.bf16.vlgmr.msrb.gmra.mxu2 %v1531_v12  ;;  %v1393_v39 = vadd.f32 %v1392_v5, %v2995_v47 }
 0x373   :  { %1431 = vmatmul.bf16.gmra.mxu1 %v1306_v22  ;;  %v1469_v28 = vadd.f32 %v1393_v39, %v2817_v13 }
 0x374   :  { %v1235_v53 = vpop.f32.mrf.mxu0 }
 0x375   :  { %v1236_v11 = vadd.f32 %v1235_v53, %v2904_v25  ;;  %v1501_v38 = vmax.f32 %v1469_v28, 0.0 }
 0x377   :  { %v1285_v29 = vmax.f32 %v1236_v11, 0.0 }
 0x378   :  { %v1394_v43 = vpop.f32.mrf.mxu1 }
 0x379   :  { %v1395_v42 = vadd.f32 %v1394_v43, %v2995_v47 }
 0x37b   :  { %v1470_v54 = vadd.f32 %v1395_v42, %v2821_v19 }
 0x37c   :  { %v1237_v10 = vpop.f32.mrf.mxu0 }
 0x37d   :  { %v1502_v37 = vmax.f32 %v1470_v54, 0.0  ;;  %v1238_v46 = vadd.f32 %v1237_v10, %v2904_v25 }
 0x37f   :  { %v1286_v56 = vmax.f32 %v1238_v46, 0.0  ;;  %v1532_v58 = vpack.c.bf16 %v1502_v37, %v1501_v38 }
 0x380   :  { %v1397_v60 = vpop.f32.mrf.mxu1 }
 0x381   :  { %v1307_v48 = vpack.c.bf16 %v1286_v56, %v1285_v29  ;;  %1625 = vmatmul.bf16.gmra.mxu2 %v1532_v58  ;;  %v1398_v13 = vadd.f32 %v1397_v60, %v2995_v47 }
 0x383   :  { %1436 = vmatmul.bf16.gmra.mxu1 %v1307_v48  ;;  %v1471_v0 = vadd.f32 %v1398_v13, %v2829_v23 }
 0x384   :  { %v1240_v31 = vpop.f32.mrf.mxu0 }
 0x385   :  { %v1241_v32 = vadd.f32 %v1240_v31, %v2904_v25  ;;  %v1503_v21 = vmax.f32 %v1471_v0, 0.0 }
 0x387   :  { %v1287_v15 = vmax.f32 %v1241_v32, 0.0 }
 0x388   :  { %v1399_v1 = vpop.f32.mrf.mxu1 }
 0x389   :  { %v1400_v19 = vadd.f32 %v1399_v1, %v2995_v47 }
 0x38b   :  { %v1472_v52 = vadd.f32 %v1400_v19, %v2833_v33 }
 0x38c   :  { %v1242_v45 = vpop.f32.mrf.mxu0 }
 0x38d   :  { %v1504_v59 = vmax.f32 %v1472_v52, 0.0  ;;  %v1243_v27 = vadd.f32 %v1242_v45, %v2904_v25 }
 0x38f   :  { %v1288_v18 = vmax.f32 %v1243_v27, 0.0  ;;  %v1533_v12 = vpack.c.bf16 %v1504_v59, %v1503_v21 }
 0x390   :  { %v1402_v34 = vpop.f32.mrf.mxu1 }
 0x391   :  { %v1308_v5 = vpack.c.bf16 %v1288_v18, %v1287_v15  ;;  %1630 = vmatmul.bf16.gmra.mxu2 %v1533_v12  ;;  %v1403_v23 = vadd.f32 %v1402_v34, %v2995_v47 }
 0x393   :  { %1441 = vmatmul.bf16.gmra.mxu1 %v1308_v5  ;;  %v1473_v39 = vadd.f32 %v1403_v23, %v2839_v51 }
 0x394   :  { %v1245_v22 = vpop.f32.mrf.mxu0 }
 0x395   :  { %v1246_v43 = vadd.f32 %v1245_v22, %v2904_v25  ;;  %v1505_v11 = vmax.f32 %v1473_v39, 0.0 }
 0x397   :  { %v1289_v38 = vmax.f32 %v1246_v43, 0.0 }
 0x398   :  { %v1404_v53 = vpop.f32.mrf.mxu1 }
 0x399   :  { %v1405_v33 = vadd.f32 %v1404_v53, %v2995_v47 }
 0x39b   :  { %v1474_v28 = vadd.f32 %v1405_v33, %v2843_v26 }
 0x39c   :  { %v1247_v42 = vpop.f32.mrf.mxu0 }
 0x39d   :  { %v1506_v54 = vmax.f32 %v1474_v28, 0.0  ;;  %v1248_v10 = vadd.f32 %v1247_v42, %v2904_v25 }
 0x39f   :  { %v1290_v37 = vmax.f32 %v1248_v10, 0.0  ;;  %v1534_v46 = vpack.c.bf16 %v1506_v54, %v1505_v11 }
 0x3a0   :  { %v1407_v29 = vpop.f32.mrf.mxu1 }
 0x3a1   :  { %v1309_v56 = vpack.c.bf16 %v1290_v37, %v1289_v38  ;;  %1635 = vmatmul.bf16.gmra.mxu2 %v1534_v46  ;;  %v1408_v51 = vadd.f32 %v1407_v29, %v2995_v47 }
 0x3a3   :  { %1446 = vmatmul.bf16.gmra.mxu1 %v1309_v56  ;;  %v1475_v48 = vadd.f32 %v1408_v51, %v2850_v14 }
 0x3a4   :  { %v1250_v58 = vpop.f32.mrf.mxu0 }
 0x3a5   :  { %v1251_v31 = vadd.f32 %v1250_v58, %v2904_v25  ;;  %v1507_v0 = vmax.f32 %v1475_v48, 0.0 }
 0x3a7   :  { %v1291_v52 = vmax.f32 %v1251_v31, 0.0 }
 0x3a8   :  { %v1409_v60 = vpop.f32.mrf.mxu1 }
 0x3a9   :  { %v1410_v26 = vadd.f32 %v1409_v60, %v2995_v47 }
 0x3ab   :  { %v1476_v13 = vadd.f32 %v1410_v26, %v2854_v17 }
 0x3ac   :  { %v1252_v1 = vpop.f32.mrf.mxu0 }
 0x3ad   :  { %v1508_v19 = vmax.f32 %v1476_v13, 0.0  ;;  %v1253_v32 = vadd.f32 %v1252_v1, %v2904_v25 }
 0x3af   :  { %v1292_v45 = vmax.f32 %v1253_v32, 0.0  ;;  %v1535_v21 = vpack.c.bf16 %v1508_v19, %v1507_v0 }
 0x3b0   :  { %v1412_v59 = vpop.f32.mrf.mxu1 }
 0x3b1   :  { %v1310_v27 = vpack.c.bf16 %v1292_v45, %v1291_v52  ;;  %1640 = vmatmul.bf16.gmra.mxu2 %v1535_v21  ;;  %v1413_v14 = vadd.f32 %v1412_v59, %v2995_v47 }
 0x3b3   :  { %1451 = vmatmul.bf16.gmra.mxu1 %v1310_v27  ;;  %v1477_v12 = vadd.f32 %v1413_v14, %v2861_v36 }
 0x3b4   :  { %v1255_v15 = vpop.f32.mrf.mxu0 }
 0x3b5   :  { %v1256_v34 = vadd.f32 %v1255_v15, %v2904_v25  ;;  %v1509_v23 = vmax.f32 %v1477_v12, 0.0 }
 0x3b7   :  { %v1293_v33 = vmax.f32 %v1256_v34, 0.0 }
 0x3b8   :  { %v1414_v18 = vpop.f32.mrf.mxu1 }
 0x3b9   :  { %v1415_v17 = vadd.f32 %v1414_v18, %v2995_v47 }
 0x3bb   :  { %v1478_v5 = vadd.f32 %v1415_v17, %v2865_v16 }
 0x3bc   :  { %v1257_v22 = vpop.f32.mrf.mxu0 }
 0x3bd   :  { %v1510_v53 = vmax.f32 %v1478_v5, 0.0  ;;  %v1258_v39 = vadd.f32 %v1257_v22, %v2904_v25 }
 0x3bf   :  { %v1294_v43 = vmax.f32 %v1258_v39, 0.0  ;;  %v1536_v28 = vpack.c.bf16 %v1510_v53, %v1509_v23  ;;  %v1563_v23 = vperm.slane %v2901_v9, 5 }
 0x3c0   :  { %v1417_v42 = vpop.f32.mrf.mxu1 }
 0x3c1   :  { %v1311_v11 = vpack.c.bf16 %v1294_v43, %v1293_v33  ;;  %1645 = vmatmul.bf16.gmra.mxu2 %v1536_v28  ;;  %v1418_v36 = vadd.f32 %v1417_v42, %v2995_v47 }
 0x3c3   :  { %1456 = vmatmul.bf16.gmra.mxu1 %v1311_v11  ;;  %v1479_v38 = vadd.f32 %v1418_v36, %v2872_v50 }
 0x3c4   :  { %v1260_v54 = vpop.f32.mrf.mxu0 }
 0x3c5   :  { %v1261_v37 = vadd.f32 %v1260_v54, %v2904_v25  ;;  %v1511_v56 = vmax.f32 %v1479_v38, 0.0 }
 0x3c7   :  { %v1295_v60 = vmax.f32 %v1261_v37, 0.0 }
 0x3c8   :  { %v1419_v10 = vpop.f32.mrf.mxu1 }
 0x3c9   :  { %v1420_v16 = vadd.f32 %v1419_v10, %v2995_v47 }
 0x3cb   :  { %v1480_v46 = vadd.f32 %v1420_v16, %v2876_v3 }
 0x3cc   :  { %v1262_v29 = vpop.f32.mrf.mxu0 }
 0x3cd   :  { %v1512_v58 = vmax.f32 %v1480_v46, 0.0  ;;  %v1263_v51 = vadd.f32 %v1262_v29, %v2904_v25 }
 0x3cf   :  { %v1296_v48 = vmax.f32 %v1263_v51, 0.0  ;;  %v1537_v26 = vpack.c.bf16 %v1512_v58, %v1511_v56 }
 0x3d0   :  { %v1422_v31 = vpop.f32.mrf.mxu1 }
 0x3d1   :  { %v1312_v13 = vpack.c.bf16 %v1296_v48, %v1295_v60  ;;  %1650 = vmatmul.bf16.gmra.mxu2 %v1537_v26  ;;  %v1423_v50 = vadd.f32 %v1422_v31, %v2995_v47 }
 0x3d3   :  { %1461 = vmatmul.bf16.gmra.mxu1 %v1312_v13  ;;  %v1481_v0 = vadd.f32 %v1423_v50, %v2883_v20 }
 0x3d5   :  { %v1513_v32 = vmax.f32 %v1481_v0, 0.0 }
 0x3d8   :  { %v1424_v1 = vpop.f32.mrf.mxu1 }
 0x3d9   :  { %v1425_v19 = vadd.f32 %v1424_v1, %v2995_v47 }
 0x3db   :  { %v1482_v3 = vadd.f32 %v1425_v19, %v2887_v7 }
 0x3dd   :  { %v1514_v52 = vmax.f32 %v1482_v3, 0.0 }
 0x3df   :  { %v1538_v45 = vpack.c.bf16 %v1514_v52, %v1513_v32 }
 0x3e0   :  { %v1427_v25 = vpop.f32.mrf.mxu1 }
 0x3e1   :  { %1655 = vmatmul.bf16.gmra.mxu2 %v1538_v45  ;;  %v1428_v21 = vadd.f32 %v1427_v25, %v2995_v47 }
 0x3e3   :  { %v1483_v27 = vadd.f32 %v1428_v21, %v2893_v40 }
 0x3e5   :  { %v1515_v18 = vmax.f32 %v1483_v27, 0.0 }
 0x3e8   :  { %v1429_v59 = vpop.f32.mrf.mxu1 }
 0x3e9   :  { %v1430_v15 = vadd.f32 %v1429_v59, %v2995_v47 }
 0x3eb   :  { %v1484_v14 = vadd.f32 %v1430_v15, %v2897_v30 }
 0x3ed   :  { %v1516_v20 = vmax.f32 %v1484_v14, 0.0 }
 0x3ef   :  { %v1539_v12 = vpack.c.bf16 %v1516_v20, %v1515_v18 }
 0x3f0   :  { %v1432_v17 = vpop.f32.mrf.mxu1 }
 0x3f1   :  { %1660 = vmatmul.bf16.gmra.mxu2 %v1539_v12  ;;  %v1433_v34 = vadd.f32 %v1432_v17, %v2995_v47 }
 0x3f3   :  { %v1485_v22 = vadd.f32 %v1433_v34, %v2910_v57 }
 0x3f4   :  { %v1621_v7 = vpop.f32.mrf.mxu2 }
 0x3f5   :  { %v1517_v33 = vmax.f32 %v1485_v22, 0.0  ;;  %v1622_v30 = vadd.f32 %v1621_v7, %v1563_v23 }
 0x3f8   :  { %v1434_v5 = vpop.f32.mrf.mxu1 }
 0x3f9   :  { %v1435_v53 = vadd.f32 %v1434_v5, %v2995_v47 }
 0x3fb   :  { %v1486_v40 = vadd.f32 %v1435_v53, %v2914_v61 }
 0x3fc   :  { %v1623_v39 = vpop.f32.mrf.mxu2 }
 0x3fd   :  { %v1518_v43 = vmax.f32 %v1486_v40, 0.0  ;;  %v1624_v28 = vadd.f32 %v1623_v39, %v1563_v23 }
 0x3ff   :  { %v2079_v42 = vpack.c.bf16 %v1624_v28, %v1622_v30  ;;  %v1540_v11 = vpack.c.bf16 %v1518_v43, %v1517_v33 }
 0x400   :  { %v1437_v54 = vpop.f32.mrf.mxu1 }
 0x401   :  { %2080 = vst [vmem:[#allocation18] sm:$0xff] %v2079_v42   ;;  %1665 = vmatmul.bf16.gmra.mxu2 %v1540_v11  ;;  %v1438_v10 = vadd.f32 %v1437_v54, %v2995_v47 }
 0x403   :  { %v1487_v9 = vadd.f32 %v1438_v10, %v2922_v55 }
 0x404   :  { %v1626_v36 = vpop.f32.mrf.mxu2 }
 0x405   :  { %v1519_v46 = vmax.f32 %v1487_v9, 0.0 }
 0x408   :  { %v1783_v57 = vld [vmem:[#allocation18] sm:$0xff]   ;;  %v1439_v38 = vpop.f32.mrf.mxu1 }
 0x409   :  { %1784 = vst [vmem:[%s3089_s10] sm:$0xff] %v1783_v57   ;;  %v1440_v61 = vadd.f32 %v1439_v38, %v2995_v47 }
 0x40b   :  { %v1488_v16 = vadd.f32 %v1440_v61, %v2926_v44 }
 0x40c   :  { %v1628_v37 = vpop.f32.mrf.mxu2 }
 0x40d   :  { %v1520_v29 = vmax.f32 %v1488_v16, 0.0 }
 0x40f   :  { %v1541_v56 = vpack.c.bf16 %v1520_v29, %v1519_v46 }
 0x410   :  { %v1442_v58 = vpop.f32.mrf.mxu1 }
 0x411   :  { %1670 = vmatmul.bf16.gmra.mxu2 %v1541_v56  ;;  %v1443_v60 = vadd.f32 %v1442_v58, %v2995_v47 }
 0x413   :  { %v1489_v26 = vadd.f32 %v1443_v60, %v2934_v24 }
 0x414   :  { %v1631_v51 = vpop.f32.mrf.mxu2 }
 0x415   :  { %v1521_v50 = vmax.f32 %v1489_v26, 0.0 }
 0x418   :  { %v1444_v48 = vpop.f32.mrf.mxu1 }
 0x419   :  { %v1445_v31 = vadd.f32 %v1444_v48, %v2995_v47 }
 0x41b   :  { %v1490_v55 = vadd.f32 %v1445_v31, %v2938_v63 }
 0x41c   :  { %v1633_v13 = vpop.f32.mrf.mxu2 }
 0x41d   :  { %v1522_v1 = vmax.f32 %v1490_v55, 0.0 }
 0x41f   :  { %v1542_v44 = vpack.c.bf16 %v1522_v1, %v1521_v50 }
 0x420   :  { %v1447_v0 = vpop.f32.mrf.mxu1 }
 0x421   :  { %1675 = vmatmul.bf16.gmra.mxu2 %v1542_v44  ;;  %v1448_v3 = vadd.f32 %v1447_v0, %v2995_v47 }
 0x423   :  { %v1491_v52 = vadd.f32 %v1448_v3, %v2946_v8 }
 0x424   :  { %v1636_v19 = vpop.f32.mrf.mxu2 }
 0x425   :  { %v1523_v21 = vmax.f32 %v1491_v52, 0.0 }
 0x428   :  { %v1449_v32 = vpop.f32.mrf.mxu1 }
 0x429   :  { %v1450_v45 = vadd.f32 %v1449_v32, %v2995_v47 }
 0x42b   :  { %v1492_v24 = vadd.f32 %v1450_v45, %v2950_v35 }
 0x42c   :  { %v1638_v25 = vpop.f32.mrf.mxu2 }
 0x42d   :  { %v1524_v59 = vmax.f32 %v1492_v24, 0.0 }
 0x42f   :  { %v1543_v63 = vpack.c.bf16 %v1524_v59, %v1523_v21 }
 0x430   :  { %v1452_v27 = vpop.f32.mrf.mxu1 }
 0x431   :  { %1680 = vmatmul.bf16.gmra.mxu2 %v1543_v63  ;;  %v1453_v14 = vadd.f32 %v1452_v27, %v2995_v47 }
 0x433   :  { %v1493_v20 = vadd.f32 %v1453_v14, %v2958_v2 }
 0x434   :  { %v1641_v15 = vpop.f32.mrf.mxu2 }
 0x435   :  { %v1525_v7 = vmax.f32 %v1493_v20, 0.0 }
 0x438   :  { %v1454_v18 = vpop.f32.mrf.mxu1 }
 0x439   :  { %v1455_v12 = vadd.f32 %v1454_v18, %v2995_v47 }
 0x43b   :  { %v1494_v8 = vadd.f32 %v1455_v12, %v2962_v62 }
 0x43c   :  { %v1643_v17 = vpop.f32.mrf.mxu2 }
 0x43d   :  { %v1526_v34 = vmax.f32 %v1494_v8, 0.0 }
 0x43f   :  { %v1544_v35 = vpack.c.bf16 %v1526_v34, %v1525_v7 }
 0x440   :  { %v1457_v5 = vpop.f32.mrf.mxu1 }
 0x441   :  { %1685 = vmatmul.bf16.gmra.mxu2 %v1544_v35  ;;  %v1458_v23 = vadd.f32 %v1457_v5, %v2995_v47 }
 0x443   :  { %v1495_v40 = vadd.f32 %v1458_v23, %v2970_v6 }
 0x444   :  { %v1646_v22 = vpop.f32.mrf.mxu2 }
 0x445   :  { %v1527_v30 = vmax.f32 %v1495_v40, 0.0 }
 0x448   :  { %v1459_v53 = vpop.f32.mrf.mxu1 }
 0x449   :  { %v1460_v39 = vadd.f32 %v1459_v53, %v2995_v47 }
 0x44b   :  { %v1496_v2 = vadd.f32 %v1460_v39, %v2974_v49 }
 0x44c   :  { %v1648_v33 = vpop.f32.mrf.mxu2 }
 0x44d   :  { %v1528_v43 = vmax.f32 %v1496_v2, 0.0 }
 0x44f   :  { %v1545_v62 = vpack.c.bf16 %v1528_v43, %v1527_v30 }
 0x450   :  { %v1462_v28 = vpop.f32.mrf.mxu1 }
 0x451   :  { %1690 = vmatmul.bf16.gmra.mxu2 %v1545_v62  ;;  %v1463_v11 = vadd.f32 %v1462_v28, %v2995_v47 }
 0x453   :  { %v1497_v36 = vadd.f32 %v1463_v11, %v2982_v4 }
 0x454   :  { %v1651_v42 = vpop.f32.mrf.mxu2 }
 0x455   :  { %v1529_v38 = vmax.f32 %v1497_v36, 0.0 }
 0x458   :  { %v1464_v54 = vpop.f32.mrf.mxu1 }
 0x459   :  { %v1465_v10 = vadd.f32 %v1464_v54, %v2995_v47 }
 0x45b   :  { %v1498_v6 = vadd.f32 %v1465_v10, %v2986_v41 }
 0x45c   :  { %v1653_v57 = vpop.f32.mrf.mxu2 }
 0x45d   :  { %v1530_v9 = vmax.f32 %v1498_v6, 0.0 }
 0x45f   :  { %v1546_v49 = vpack.c.bf16 %v1530_v9, %v1529_v38 }
 0x461   :  { %1695 = vmatmul.bf16.vlgmr.msra.gmra.mxu3 %v1546_v49 }
 0x464   :  { %v1656_v61 = vpop.f32.mrf.mxu2 }
 0x46c   :  { %v1658_v16 = vpop.f32.mrf.mxu2 }
 0x474   :  { %v1661_v37 = vpop.f32.mrf.mxu2 }
 0x47c   :  { %v1663_v46 = vpop.f32.mrf.mxu2 }
 0x484   :  { %v1666_v29 = vpop.f32.mrf.mxu2 }
 0x48c   :  { %v1668_v56 = vpop.f32.mrf.mxu2 }
 0x494   :  { %v1671_v58 = vpop.f32.mrf.mxu2 }
 0x49c   :  { %v1673_v51 = vpop.f32.mrf.mxu2 }
 0x4a4   :  { %v1676_v60 = vpop.f32.mrf.mxu2 }
 0x4ac   :  { %v1678_v48 = vpop.f32.mrf.mxu2 }
 0x4b4   :  { %v1681_v4 = vpop.f32.mrf.mxu2 }
 0x4bc   :  { %v1683_v26 = vpop.f32.mrf.mxu2 }
 0x4c4   :  { %v1686_v47 = vpop.f32.mrf.mxu2 }
 0x4cc   :  { %v1688_v31 = vpop.f32.mrf.mxu2 }
 0x4d4   :  { %v1691_v41 = vpop.f32.mrf.mxu2 }
 0x4dc   :  { %v1693_v55 = vpop.f32.mrf.mxu2 }
 0x4e4   :  { %v1696_v13 = vpop.f32.mrf.mxu3 }
 0x4ec   :  { %v1698_v50 = vpop.f32.mrf.mxu3 }
 0x4ed   :  { %1814 = vsyncpa [#allocation3], 1 }
 0x4ee   :  { %1815 = vsyncpa [#allocation5], 1 }
 0x4ef   :  { %1816 = vsyncpa [#allocation8], 1 }
 0x4f0   :  { %1817 = vsyncpa [#allocation11], 1 }
 0x4f1   :  { %1818 = vsyncpa [#allocation14], 1 }
 0x4f2   :  { %1819 = vsyncpa [#allocation17], 1 }

</bundles_post_ra>
